<compile_context>
chip_gen: v7x
topology: tpu7x:2x2x1
jax: 0.10.0
libtpu: 0.0.40
codegen_flags: <defaults>
</compile_context>

<pallas_src>
import jax
import jax.numpy as jnp
from jax import lax
from jax.experimental import pallas as pl
from jax.experimental.pallas import tpu as pltpu

_LANE = 128  # per-gate padded width (lane-aligned)


def lstm_namer_kernel(x_ref, wih_ref, whh_ref, b_ref, wlin_ref, blin_ref, o_ref):
    """LSTM (batch=1) recurrence + Linear + LogSoftmax of the last timestep.

    Shapes (gate-padded layout, P = 128):
      x_ref:    (seq, in)
      wih_ref:  (in, 4P)   gate k in columns [k*P, k*P + H)
      whh_ref:  (P, 4P)    rows H..P-1 are zero padding
      b_ref:    (1, 4P)
      wlin_ref: (P, out)   rows H..P-1 are zero padding
      blin_ref: (1, out)
      o_ref:    (1, out)
    """
    seq_len = x_ref.shape[0]
    P = _LANE

    # Hoisted input projection + bias: removes one MXU push per sequential
    # step and folds the bias add out of the recurrence.
    gates_x = (jnp.dot(x_ref[...], wih_ref[...],
                       preferred_element_type=jnp.float32)
               + b_ref[...])                               # (seq, 4P)

    h = jnp.zeros((1, P), jnp.float32)
    c = jnp.zeros((1, P), jnp.float32)

    # Fully unrolled recurrence (seq_len is static & small): gives the
    # scheduler cross-step visibility to co-issue MXU / EUP / VPU slots.
    for t in range(seq_len):
        gates = gates_x[t:t + 1, :] + jnp.dot(
            h, whh_ref[...], preferred_element_type=jnp.float32)   # (1, 4P)
        # 128-lane-aligned slices -> plain vreg selects, no masked extracts.
        i_g = jax.nn.sigmoid(gates[:, 0 * P:1 * P])
        f_g = jax.nn.sigmoid(gates[:, 1 * P:2 * P])
        g_g = jnp.tanh(gates[:, 2 * P:3 * P])
        o_g = jax.nn.sigmoid(gates[:, 3 * P:4 * P])
        # Padded lanes stay exactly zero: gates there are 0, so c stays 0 and
        # h = sigmoid(0) * tanh(0) = 0.
        c = f_g * c + i_g * g_g
        h = o_g * jnp.tanh(c)

    # Final linear + log_softmax on the last timestep only (y[-1] depends only
    # on h_last; log_softmax acts per-row).
    logits = (jnp.dot(h, wlin_ref[...], preferred_element_type=jnp.float32)
              + blin_ref[...])                             # (1, out)
    m = jnp.max(logits, axis=-1, keepdims=True)
    z = logits - m
    lse = jnp.log(jnp.sum(jnp.exp(z), axis=-1, keepdims=True))
    o_ref[...] = z - lse


def prepare_lstm_namer_params(w_ih, w_hh, b_ih, b_hh, w_lin, b_lin):
    """One-time repacking of PyTorch-layout params into the kernel layout.

    Hoisted out of the per-call path (weights are static per model):
      w_ih:  (4H, in)  -> (in, 4P)   transposed, gate-padded columns
      w_hh:  (4H, H)   -> (P, 4P)    transposed, zero-padded rows, gate-padded
      b_ih + b_hh       -> (1, 4P)   gate-padded
      w_lin: (out, H)  -> (P, out)   transposed, zero-padded rows
      b_lin: (out,)    -> (1, out)
    PyTorch gate packing order (i, f, g, o) is preserved block-by-block.
    """
    four_h, _ = w_ih.shape
    H = four_h // 4
    out_size = w_lin.shape[0]
    P = _LANE
    assert H <= P, "hidden_size > 128 would need a different gate packing"

    def pad_gate_cols(w_t):
        # (rows, 4H) -> (rows, 4P) with gate k placed at columns [k*P, k*P+H)
        rows = w_t.shape[0]
        out = jnp.zeros((rows, 4 * P), jnp.float32)
        for k in range(4):
            out = out.at[:, k * P:k * P + H].set(w_t[:, k * H:(k + 1) * H])
        return out

    w_ih_p = pad_gate_cols(jnp.transpose(w_ih).astype(jnp.float32))      # (in, 4P)
    w_hh_t = jnp.zeros((P, 4 * H), jnp.float32).at[:H, :].set(
        jnp.transpose(w_hh).astype(jnp.float32))
    w_hh_p = pad_gate_cols(w_hh_t)                                       # (P, 4P)
    bias_p = pad_gate_cols(
        (b_ih + b_hh).astype(jnp.float32).reshape(1, 4 * H))             # (1, 4P)
    w_lin_p = jnp.zeros((P, out_size), jnp.float32).at[:H, :].set(
        jnp.transpose(w_lin).astype(jnp.float32))                        # (P, out)
    b_lin_p = b_lin.reshape(1, out_size).astype(jnp.float32)             # (1, out)
    return (w_ih_p, w_hh_p, bias_p, w_lin_p, b_lin_p)


@jax.jit
def lstm_namer_forward(x, params):
    """x: (seq, in) f32, params from prepare_lstm_namer_params.
    Returns (out_size,) log-probs of the last timestep."""
    w_ih_p, w_hh_p, bias_p, w_lin_p, b_lin_p = params
    out_size = w_lin_p.shape[1]

    # Everything fits in VMEM by orders of magnitude -> no grid, whole-array
    # VMEM residency, single kernel invocation.
    vmem = pl.BlockSpec(memory_space=pltpu.MemorySpace.VMEM)
    out = pl.pallas_call(
        lstm_namer_kernel,
        out_shape=jax.ShapeDtypeStruct((1, out_size), jnp.float32),
        in_specs=[vmem] * 6,
        out_specs=vmem,
    )(x.astype(jnp.float32), w_ih_p, w_hh_p, bias_p, w_lin_p, b_lin_p)
    return out[0]


def _reference_forward(x, w_ih, w_hh, b_ih, b_hh, w_lin, b_lin):
    """Pure-JAX reference matching torch.nn.LSTM / Linear / LogSoftmax."""
    H = w_hh.shape[1]
    h = jnp.zeros((H,), jnp.float32)
    c = jnp.zeros((H,), jnp.float32)

    def step(carry, x_t):
        h, c = carry
        gates = x_t @ w_ih.T + b_ih + h @ w_hh.T + b_hh
        i = jax.nn.sigmoid(gates[0:H])
        f = jax.nn.sigmoid(gates[H:2 * H])
        g = jnp.tanh(gates[2 * H:3 * H])
        o = jax.nn.sigmoid(gates[3 * H:4 * H])
        c = f * c + i * g
        h = o * jnp.tanh(c)
        return (h, c), h

    (_, _), hs = lax.scan(step, (h, c), x)
    logits = hs @ w_lin.T + b_lin
    logp = jax.nn.log_softmax(logits, axis=1)
    return logp[-1]


if __name__ == "__main__":
    seq_len, in_size, hidden_size, out_size = 8, 16, 32, 26

    key = jax.random.PRNGKey(0)
    ks = jax.random.split(key, 7)
    # Deterministic synthetic parameters (torch-like uniform init scale).
    s = 1.0 / jnp.sqrt(hidden_size)
    w_ih = jax.random.uniform(ks[0], (4 * hidden_size, in_size), jnp.float32, -s, s)
    w_hh = jax.random.uniform(ks[1], (4 * hidden_size, hidden_size), jnp.float32, -s, s)
    b_ih = jax.random.uniform(ks[2], (4 * hidden_size,), jnp.float32, -s, s)
    b_hh = jax.random.uniform(ks[3], (4 * hidden_size,), jnp.float32, -s, s)
    w_lin = jax.random.uniform(ks[4], (out_size, hidden_size), jnp.float32, -s, s)
    b_lin = jax.random.uniform(ks[5], (out_size,), jnp.float32, -s, s)
    x = jax.random.normal(ks[6], (seq_len, in_size), jnp.float32)

    # One-time parameter repacking (hoisted out of the per-call path).
    params = prepare_lstm_namer_params(w_ih, w_hh, b_ih, b_hh, w_lin, b_lin)
    params = jax.tree_util.tree_map(jax.block_until_ready, params)

    y = lstm_namer_forward(x, params)
    y = jax.block_until_ready(y)

    y_ref = _reference_forward(x, w_ih, w_hh, b_ih, b_hh, w_lin, b_lin)
    assert y.shape == (out_size,)
    assert jnp.allclose(y, y_ref, atol=1e-5, rtol=1e-5), (y, y_ref)

    print("KERNEL_OK")
</pallas_src>

<mosaic_0001>
module attributes {stable_mosaic.version = 11 : i64} {
  func.func @lstm_namer_kernel(%arg0: memref<8x16xf32, #tpu.memory_space<vmem>>, %arg1: memref<16x512xf32, #tpu.memory_space<vmem>>, %arg2: memref<128x512xf32, #tpu.memory_space<vmem>>, %arg3: memref<1x512xf32, #tpu.memory_space<vmem>>, %arg4: memref<128x26xf32, #tpu.memory_space<vmem>>, %arg5: memref<1x26xf32, #tpu.memory_space<vmem>>, %arg6: memref<1x26xf32, #tpu.memory_space<vmem>>) attributes {dimension_semantics = [], scalar_prefetch = 0 : i64, scratch_operands = 0 : i64, tpu.core_type = #tpu.core_type<tc>} {
    %c0 = arith.constant 0 : index
    %c0_0 = arith.constant 0 : index
    %0 = vector.load %arg0[%c0, %c0_0] : memref<8x16xf32, #tpu.memory_space<vmem>>, vector<8x16xf32>
    %c0_1 = arith.constant 0 : index
    %c0_2 = arith.constant 0 : index
    %1 = vector.load %arg1[%c0_1, %c0_2] : memref<16x512xf32, #tpu.memory_space<vmem>>, vector<16x512xf32>
    %cst = arith.constant dense<0.000000e+00> : vector<8x512xf32>
    %2 = tpu.matmul %0, %1, %cst {dimension_numbers = #tpu.dot_dimension_numbers<[1], [0], [0], [1], [0, 0, 1, 1], [], []>} : vector<8x16xf32>, vector<16x512xf32>, vector<8x512xf32> -> vector<8x512xf32>
    %c0_3 = arith.constant 0 : index
    %c0_4 = arith.constant 0 : index
    %3 = vector.load %arg3[%c0_3, %c0_4] : memref<1x512xf32, #tpu.memory_space<vmem>>, vector<1x512xf32>
    %4 = vector.broadcast %3 : vector<1x512xf32> to vector<8x512xf32>
    %5 = arith.addf %2, %4 : vector<8x512xf32>
    %cst_5 = arith.constant 0.000000e+00 : f32
    %6 = vector.broadcast %cst_5 : f32 to vector<1x128xf32>
    %cst_6 = arith.constant 0.000000e+00 : f32
    %7 = vector.broadcast %cst_6 : f32 to vector<1x128xf32>
    %8 = vector.extract_strided_slice %5 {offsets = [0, 0], sizes = [1, 512], strides = [1, 1]} : vector<8x512xf32> to vector<1x512xf32>
    %c0_7 = arith.constant 0 : index
    %c0_8 = arith.constant 0 : index
    %9 = vector.load %arg2[%c0_7, %c0_8] : memref<128x512xf32, #tpu.memory_space<vmem>>, vector<128x512xf32>
    %cst_9 = arith.constant dense<0.000000e+00> : vector<1x512xf32>
    %10 = tpu.matmul %6, %9, %cst_9 {dimension_numbers = #tpu.dot_dimension_numbers<[1], [0], [0], [1], [0, 0, 1, 1], [], []>} : vector<1x128xf32>, vector<128x512xf32>, vector<1x512xf32> -> vector<1x512xf32>
    %11 = arith.addf %8, %10 : vector<1x512xf32>
    %12 = vector.extract_strided_slice %11 {offsets = [0, 0], sizes = [1, 128], strides = [1, 1]} : vector<1x512xf32> to vector<1x128xf32>
    %13 = arith.negf %12 : vector<1x128xf32>
    %14 = math.exp %13 : vector<1x128xf32>
    %cst_10 = arith.constant 1.000000e+00 : f32
    %15 = vector.broadcast %cst_10 : f32 to vector<1x128xf32>
    %16 = arith.addf %15, %14 : vector<1x128xf32>
    %17 = arith.divf %15, %16 : vector<1x128xf32>
    %18 = vector.extract_strided_slice %11 {offsets = [0, 128], sizes = [1, 128], strides = [1, 1]} : vector<1x512xf32> to vector<1x128xf32>
    %19 = arith.negf %18 : vector<1x128xf32>
    %20 = math.exp %19 : vector<1x128xf32>
    %cst_11 = arith.constant 1.000000e+00 : f32
    %21 = vector.broadcast %cst_11 : f32 to vector<1x128xf32>
    %22 = arith.addf %21, %20 : vector<1x128xf32>
    %23 = arith.divf %21, %22 : vector<1x128xf32>
    %24 = vector.extract_strided_slice %11 {offsets = [0, 256], sizes = [1, 128], strides = [1, 1]} : vector<1x512xf32> to vector<1x128xf32>
    %25 = math.tanh %24 : vector<1x128xf32>
    %26 = vector.extract_strided_slice %11 {offsets = [0, 384], sizes = [1, 128], strides = [1, 1]} : vector<1x512xf32> to vector<1x128xf32>
    %27 = arith.negf %26 : vector<1x128xf32>
    %28 = math.exp %27 : vector<1x128xf32>
    %cst_12 = arith.constant 1.000000e+00 : f32
    %29 = vector.broadcast %cst_12 : f32 to vector<1x128xf32>
    %30 = arith.addf %29, %28 : vector<1x128xf32>
    %31 = arith.divf %29, %30 : vector<1x128xf32>
    %32 = arith.mulf %23, %7 : vector<1x128xf32>
    %33 = arith.mulf %17, %25 : vector<1x128xf32>
    %34 = arith.addf %32, %33 : vector<1x128xf32>
    %35 = math.tanh %34 : vector<1x128xf32>
    %36 = arith.mulf %31, %35 : vector<1x128xf32>
    %37 = vector.extract_strided_slice %5 {offsets = [1, 0], sizes = [1, 512], strides = [1, 1]} : vector<8x512xf32> to vector<1x512xf32>
    %c0_13 = arith.constant 0 : index
    %c0_14 = arith.constant 0 : index
    %38 = vector.load %arg2[%c0_13, %c0_14] : memref<128x512xf32, #tpu.memory_space<vmem>>, vector<128x512xf32>
    %cst_15 = arith.constant dense<0.000000e+00> : vector<1x512xf32>
    %39 = tpu.matmul %36, %38, %cst_15 {dimension_numbers = #tpu.dot_dimension_numbers<[1], [0], [0], [1], [0, 0, 1, 1], [], []>} : vector<1x128xf32>, vector<128x512xf32>, vector<1x512xf32> -> vector<1x512xf32>
    %40 = arith.addf %37, %39 : vector<1x512xf32>
    %41 = vector.extract_strided_slice %40 {offsets = [0, 0], sizes = [1, 128], strides = [1, 1]} : vector<1x512xf32> to vector<1x128xf32>
    %42 = arith.negf %41 : vector<1x128xf32>
    %43 = math.exp %42 : vector<1x128xf32>
    %cst_16 = arith.constant 1.000000e+00 : f32
    %44 = vector.broadcast %cst_16 : f32 to vector<1x128xf32>
    %45 = arith.addf %44, %43 : vector<1x128xf32>
    %46 = arith.divf %44, %45 : vector<1x128xf32>
    %47 = vector.extract_strided_slice %40 {offsets = [0, 128], sizes = [1, 128], strides = [1, 1]} : vector<1x512xf32> to vector<1x128xf32>
    %48 = arith.negf %47 : vector<1x128xf32>
    %49 = math.exp %48 : vector<1x128xf32>
    %cst_17 = arith.constant 1.000000e+00 : f32
    %50 = vector.broadcast %cst_17 : f32 to vector<1x128xf32>
    %51 = arith.addf %50, %49 : vector<1x128xf32>
    %52 = arith.divf %50, %51 : vector<1x128xf32>
    %53 = vector.extract_strided_slice %40 {offsets = [0, 256], sizes = [1, 128], strides = [1, 1]} : vector<1x512xf32> to vector<1x128xf32>
    %54 = math.tanh %53 : vector<1x128xf32>
    %55 = vector.extract_strided_slice %40 {offsets = [0, 384], sizes = [1, 128], strides = [1, 1]} : vector<1x512xf32> to vector<1x128xf32>
    %56 = arith.negf %55 : vector<1x128xf32>
    %57 = math.exp %56 : vector<1x128xf32>
    %cst_18 = arith.constant 1.000000e+00 : f32
    %58 = vector.broadcast %cst_18 : f32 to vector<1x128xf32>
    %59 = arith.addf %58, %57 : vector<1x128xf32>
    %60 = arith.divf %58, %59 : vector<1x128xf32>
    %61 = arith.mulf %52, %34 : vector<1x128xf32>
    %62 = arith.mulf %46, %54 : vector<1x128xf32>
    %63 = arith.addf %61, %62 : vector<1x128xf32>
    %64 = math.tanh %63 : vector<1x128xf32>
    %65 = arith.mulf %60, %64 : vector<1x128xf32>
    %66 = vector.extract_strided_slice %5 {offsets = [2, 0], sizes = [1, 512], strides = [1, 1]} : vector<8x512xf32> to vector<1x512xf32>
    %c0_19 = arith.constant 0 : index
    %c0_20 = arith.constant 0 : index
    %67 = vector.load %arg2[%c0_19, %c0_20] : memref<128x512xf32, #tpu.memory_space<vmem>>, vector<128x512xf32>
    %cst_21 = arith.constant dense<0.000000e+00> : vector<1x512xf32>
    %68 = tpu.matmul %65, %67, %cst_21 {dimension_numbers = #tpu.dot_dimension_numbers<[1], [0], [0], [1], [0, 0, 1, 1], [], []>} : vector<1x128xf32>, vector<128x512xf32>, vector<1x512xf32> -> vector<1x512xf32>
    %69 = arith.addf %66, %68 : vector<1x512xf32>
    %70 = vector.extract_strided_slice %69 {offsets = [0, 0], sizes = [1, 128], strides = [1, 1]} : vector<1x512xf32> to vector<1x128xf32>
    %71 = arith.negf %70 : vector<1x128xf32>
    %72 = math.exp %71 : vector<1x128xf32>
    %cst_22 = arith.constant 1.000000e+00 : f32
    %73 = vector.broadcast %cst_22 : f32 to vector<1x128xf32>
    %74 = arith.addf %73, %72 : vector<1x128xf32>
    %75 = arith.divf %73, %74 : vector<1x128xf32>
    %76 = vector.extract_strided_slice %69 {offsets = [0, 128], sizes = [1, 128], strides = [1, 1]} : vector<1x512xf32> to vector<1x128xf32>
    %77 = arith.negf %76 : vector<1x128xf32>
    %78 = math.exp %77 : vector<1x128xf32>
    %cst_23 = arith.constant 1.000000e+00 : f32
    %79 = vector.broadcast %cst_23 : f32 to vector<1x128xf32>
    %80 = arith.addf %79, %78 : vector<1x128xf32>
    %81 = arith.divf %79, %80 : vector<1x128xf32>
    %82 = vector.extract_strided_slice %69 {offsets = [0, 256], sizes = [1, 128], strides = [1, 1]} : vector<1x512xf32> to vector<1x128xf32>
    %83 = math.tanh %82 : vector<1x128xf32>
    %84 = vector.extract_strided_slice %69 {offsets = [0, 384], sizes = [1, 128], strides = [1, 1]} : vector<1x512xf32> to vector<1x128xf32>
    %85 = arith.negf %84 : vector<1x128xf32>
    %86 = math.exp %85 : vector<1x128xf32>
    %cst_24 = arith.constant 1.000000e+00 : f32
    %87 = vector.broadcast %cst_24 : f32 to vector<1x128xf32>
    %88 = arith.addf %87, %86 : vector<1x128xf32>
    %89 = arith.divf %87, %88 : vector<1x128xf32>
    %90 = arith.mulf %81, %63 : vector<1x128xf32>
    %91 = arith.mulf %75, %83 : vector<1x128xf32>
    %92 = arith.addf %90, %91 : vector<1x128xf32>
    %93 = math.tanh %92 : vector<1x128xf32>
    %94 = arith.mulf %89, %93 : vector<1x128xf32>
    %95 = vector.extract_strided_slice %5 {offsets = [3, 0], sizes = [1, 512], strides = [1, 1]} : vector<8x512xf32> to vector<1x512xf32>
    %c0_25 = arith.constant 0 : index
    %c0_26 = arith.constant 0 : index
    %96 = vector.load %arg2[%c0_25, %c0_26] : memref<128x512xf32, #tpu.memory_space<vmem>>, vector<128x512xf32>
    %cst_27 = arith.constant dense<0.000000e+00> : vector<1x512xf32>
    %97 = tpu.matmul %94, %96, %cst_27 {dimension_numbers = #tpu.dot_dimension_numbers<[1], [0], [0], [1], [0, 0, 1, 1], [], []>} : vector<1x128xf32>, vector<128x512xf32>, vector<1x512xf32> -> vector<1x512xf32>
    %98 = arith.addf %95, %97 : vector<1x512xf32>
    %99 = vector.extract_strided_slice %98 {offsets = [0, 0], sizes = [1, 128], strides = [1, 1]} : vector<1x512xf32> to vector<1x128xf32>
    %100 = arith.negf %99 : vector<1x128xf32>
    %101 = math.exp %100 : vector<1x128xf32>
    %cst_28 = arith.constant 1.000000e+00 : f32
    %102 = vector.broadcast %cst_28 : f32 to vector<1x128xf32>
    %103 = arith.addf %102, %101 : vector<1x128xf32>
    %104 = arith.divf %102, %103 : vector<1x128xf32>
    %105 = vector.extract_strided_slice %98 {offsets = [0, 128], sizes = [1, 128], strides = [1, 1]} : vector<1x512xf32> to vector<1x128xf32>
    %106 = arith.negf %105 : vector<1x128xf32>
    %107 = math.exp %106 : vector<1x128xf32>
    %cst_29 = arith.constant 1.000000e+00 : f32
    %108 = vector.broadcast %cst_29 : f32 to vector<1x128xf32>
    %109 = arith.addf %108, %107 : vector<1x128xf32>
    %110 = arith.divf %108, %109 : vector<1x128xf32>
    %111 = vector.extract_strided_slice %98 {offsets = [0, 256], sizes = [1, 128], strides = [1, 1]} : vector<1x512xf32> to vector<1x128xf32>
    %112 = math.tanh %111 : vector<1x128xf32>
    %113 = vector.extract_strided_slice %98 {offsets = [0, 384], sizes = [1, 128], strides = [1, 1]} : vector<1x512xf32> to vector<1x128xf32>
    %114 = arith.negf %113 : vector<1x128xf32>
    %115 = math.exp %114 : vector<1x128xf32>
    %cst_30 = arith.constant 1.000000e+00 : f32
    %116 = vector.broadcast %cst_30 : f32 to vector<1x128xf32>
    %117 = arith.addf %116, %115 : vector<1x128xf32>
    %118 = arith.divf %116, %117 : vector<1x128xf32>
    %119 = arith.mulf %110, %92 : vector<1x128xf32>
    %120 = arith.mulf %104, %112 : vector<1x128xf32>
    %121 = arith.addf %119, %120 : vector<1x128xf32>
    %122 = math.tanh %121 : vector<1x128xf32>
    %123 = arith.mulf %118, %122 : vector<1x128xf32>
    %124 = vector.extract_strided_slice %5 {offsets = [4, 0], sizes = [1, 512], strides = [1, 1]} : vector<8x512xf32> to vector<1x512xf32>
    %c0_31 = arith.constant 0 : index
    %c0_32 = arith.constant 0 : index
    %125 = vector.load %arg2[%c0_31, %c0_32] : memref<128x512xf32, #tpu.memory_space<vmem>>, vector<128x512xf32>
    %cst_33 = arith.constant dense<0.000000e+00> : vector<1x512xf32>
    %126 = tpu.matmul %123, %125, %cst_33 {dimension_numbers = #tpu.dot_dimension_numbers<[1], [0], [0], [1], [0, 0, 1, 1], [], []>} : vector<1x128xf32>, vector<128x512xf32>, vector<1x512xf32> -> vector<1x512xf32>
    %127 = arith.addf %124, %126 : vector<1x512xf32>
    %128 = vector.extract_strided_slice %127 {offsets = [0, 0], sizes = [1, 128], strides = [1, 1]} : vector<1x512xf32> to vector<1x128xf32>
    %129 = arith.negf %128 : vector<1x128xf32>
    %130 = math.exp %129 : vector<1x128xf32>
    %cst_34 = arith.constant 1.000000e+00 : f32
    %131 = vector.broadcast %cst_34 : f32 to vector<1x128xf32>
    %132 = arith.addf %131, %130 : vector<1x128xf32>
    %133 = arith.divf %131, %132 : vector<1x128xf32>
    %134 = vector.extract_strided_slice %127 {offsets = [0, 128], sizes = [1, 128], strides = [1, 1]} : vector<1x512xf32> to vector<1x128xf32>
    %135 = arith.negf %134 : vector<1x128xf32>
    %136 = math.exp %135 : vector<1x128xf32>
    %cst_35 = arith.constant 1.000000e+00 : f32
    %137 = vector.broadcast %cst_35 : f32 to vector<1x128xf32>
    %138 = arith.addf %137, %136 : vector<1x128xf32>
    %139 = arith.divf %137, %138 : vector<1x128xf32>
    %140 = vector.extract_strided_slice %127 {offsets = [0, 256], sizes = [1, 128], strides = [1, 1]} : vector<1x512xf32> to vector<1x128xf32>
    %141 = math.tanh %140 : vector<1x128xf32>
    %142 = vector.extract_strided_slice %127 {offsets = [0, 384], sizes = [1, 128], strides = [1, 1]} : vector<1x512xf32> to vector<1x128xf32>
    %143 = arith.negf %142 : vector<1x128xf32>
    %144 = math.exp %143 : vector<1x128xf32>
    %cst_36 = arith.constant 1.000000e+00 : f32
    %145 = vector.broadcast %cst_36 : f32 to vector<1x128xf32>
    %146 = arith.addf %145, %144 : vector<1x128xf32>
    %147 = arith.divf %145, %146 : vector<1x128xf32>
    %148 = arith.mulf %139, %121 : vector<1x128xf32>
    %149 = arith.mulf %133, %141 : vector<1x128xf32>
    %150 = arith.addf %148, %149 : vector<1x128xf32>
    %151 = math.tanh %150 : vector<1x128xf32>
    %152 = arith.mulf %147, %151 : vector<1x128xf32>
    %153 = vector.extract_strided_slice %5 {offsets = [5, 0], sizes = [1, 512], strides = [1, 1]} : vector<8x512xf32> to vector<1x512xf32>
    %c0_37 = arith.constant 0 : index
    %c0_38 = arith.constant 0 : index
    %154 = vector.load %arg2[%c0_37, %c0_38] : memref<128x512xf32, #tpu.memory_space<vmem>>, vector<128x512xf32>
    %cst_39 = arith.constant dense<0.000000e+00> : vector<1x512xf32>
    %155 = tpu.matmul %152, %154, %cst_39 {dimension_numbers = #tpu.dot_dimension_numbers<[1], [0], [0], [1], [0, 0, 1, 1], [], []>} : vector<1x128xf32>, vector<128x512xf32>, vector<1x512xf32> -> vector<1x512xf32>
    %156 = arith.addf %153, %155 : vector<1x512xf32>
    %157 = vector.extract_strided_slice %156 {offsets = [0, 0], sizes = [1, 128], strides = [1, 1]} : vector<1x512xf32> to vector<1x128xf32>
    %158 = arith.negf %157 : vector<1x128xf32>
    %159 = math.exp %158 : vector<1x128xf32>
    %cst_40 = arith.constant 1.000000e+00 : f32
    %160 = vector.broadcast %cst_40 : f32 to vector<1x128xf32>
    %161 = arith.addf %160, %159 : vector<1x128xf32>
    %162 = arith.divf %160, %161 : vector<1x128xf32>
    %163 = vector.extract_strided_slice %156 {offsets = [0, 128], sizes = [1, 128], strides = [1, 1]} : vector<1x512xf32> to vector<1x128xf32>
    %164 = arith.negf %163 : vector<1x128xf32>
    %165 = math.exp %164 : vector<1x128xf32>
    %cst_41 = arith.constant 1.000000e+00 : f32
    %166 = vector.broadcast %cst_41 : f32 to vector<1x128xf32>
    %167 = arith.addf %166, %165 : vector<1x128xf32>
    %168 = arith.divf %166, %167 : vector<1x128xf32>
    %169 = vector.extract_strided_slice %156 {offsets = [0, 256], sizes = [1, 128], strides = [1, 1]} : vector<1x512xf32> to vector<1x128xf32>
    %170 = math.tanh %169 : vector<1x128xf32>
    %171 = vector.extract_strided_slice %156 {offsets = [0, 384], sizes = [1, 128], strides = [1, 1]} : vector<1x512xf32> to vector<1x128xf32>
    %172 = arith.negf %171 : vector<1x128xf32>
    %173 = math.exp %172 : vector<1x128xf32>
    %cst_42 = arith.constant 1.000000e+00 : f32
    %174 = vector.broadcast %cst_42 : f32 to vector<1x128xf32>
    %175 = arith.addf %174, %173 : vector<1x128xf32>
    %176 = arith.divf %174, %175 : vector<1x128xf32>
    %177 = arith.mulf %168, %150 : vector<1x128xf32>
    %178 = arith.mulf %162, %170 : vector<1x128xf32>
    %179 = arith.addf %177, %178 : vector<1x128xf32>
    %180 = math.tanh %179 : vector<1x128xf32>
    %181 = arith.mulf %176, %180 : vector<1x128xf32>
    %182 = vector.extract_strided_slice %5 {offsets = [6, 0], sizes = [1, 512], strides = [1, 1]} : vector<8x512xf32> to vector<1x512xf32>
    %c0_43 = arith.constant 0 : index
    %c0_44 = arith.constant 0 : index
    %183 = vector.load %arg2[%c0_43, %c0_44] : memref<128x512xf32, #tpu.memory_space<vmem>>, vector<128x512xf32>
    %cst_45 = arith.constant dense<0.000000e+00> : vector<1x512xf32>
    %184 = tpu.matmul %181, %183, %cst_45 {dimension_numbers = #tpu.dot_dimension_numbers<[1], [0], [0], [1], [0, 0, 1, 1], [], []>} : vector<1x128xf32>, vector<128x512xf32>, vector<1x512xf32> -> vector<1x512xf32>
    %185 = arith.addf %182, %184 : vector<1x512xf32>
    %186 = vector.extract_strided_slice %185 {offsets = [0, 0], sizes = [1, 128], strides = [1, 1]} : vector<1x512xf32> to vector<1x128xf32>
    %187 = arith.negf %186 : vector<1x128xf32>
    %188 = math.exp %187 : vector<1x128xf32>
    %cst_46 = arith.constant 1.000000e+00 : f32
    %189 = vector.broadcast %cst_46 : f32 to vector<1x128xf32>
    %190 = arith.addf %189, %188 : vector<1x128xf32>
    %191 = arith.divf %189, %190 : vector<1x128xf32>
    %192 = vector.extract_strided_slice %185 {offsets = [0, 128], sizes = [1, 128], strides = [1, 1]} : vector<1x512xf32> to vector<1x128xf32>
    %193 = arith.negf %192 : vector<1x128xf32>
    %194 = math.exp %193 : vector<1x128xf32>
    %cst_47 = arith.constant 1.000000e+00 : f32
    %195 = vector.broadcast %cst_47 : f32 to vector<1x128xf32>
    %196 = arith.addf %195, %194 : vector<1x128xf32>
    %197 = arith.divf %195, %196 : vector<1x128xf32>
    %198 = vector.extract_strided_slice %185 {offsets = [0, 256], sizes = [1, 128], strides = [1, 1]} : vector<1x512xf32> to vector<1x128xf32>
    %199 = math.tanh %198 : vector<1x128xf32>
    %200 = vector.extract_strided_slice %185 {offsets = [0, 384], sizes = [1, 128], strides = [1, 1]} : vector<1x512xf32> to vector<1x128xf32>
    %201 = arith.negf %200 : vector<1x128xf32>
    %202 = math.exp %201 : vector<1x128xf32>
    %cst_48 = arith.constant 1.000000e+00 : f32
    %203 = vector.broadcast %cst_48 : f32 to vector<1x128xf32>
    %204 = arith.addf %203, %202 : vector<1x128xf32>
    %205 = arith.divf %203, %204 : vector<1x128xf32>
    %206 = arith.mulf %197, %179 : vector<1x128xf32>
    %207 = arith.mulf %191, %199 : vector<1x128xf32>
    %208 = arith.addf %206, %207 : vector<1x128xf32>
    %209 = math.tanh %208 : vector<1x128xf32>
    %210 = arith.mulf %205, %209 : vector<1x128xf32>
    %211 = vector.extract_strided_slice %5 {offsets = [7, 0], sizes = [1, 512], strides = [1, 1]} : vector<8x512xf32> to vector<1x512xf32>
    %c0_49 = arith.constant 0 : index
    %c0_50 = arith.constant 0 : index
    %212 = vector.load %arg2[%c0_49, %c0_50] : memref<128x512xf32, #tpu.memory_space<vmem>>, vector<128x512xf32>
    %cst_51 = arith.constant dense<0.000000e+00> : vector<1x512xf32>
    %213 = tpu.matmul %210, %212, %cst_51 {dimension_numbers = #tpu.dot_dimension_numbers<[1], [0], [0], [1], [0, 0, 1, 1], [], []>} : vector<1x128xf32>, vector<128x512xf32>, vector<1x512xf32> -> vector<1x512xf32>
    %214 = arith.addf %211, %213 : vector<1x512xf32>
    %215 = vector.extract_strided_slice %214 {offsets = [0, 0], sizes = [1, 128], strides = [1, 1]} : vector<1x512xf32> to vector<1x128xf32>
    %216 = arith.negf %215 : vector<1x128xf32>
    %217 = math.exp %216 : vector<1x128xf32>
    %cst_52 = arith.constant 1.000000e+00 : f32
    %218 = vector.broadcast %cst_52 : f32 to vector<1x128xf32>
    %219 = arith.addf %218, %217 : vector<1x128xf32>
    %220 = arith.divf %218, %219 : vector<1x128xf32>
    %221 = vector.extract_strided_slice %214 {offsets = [0, 128], sizes = [1, 128], strides = [1, 1]} : vector<1x512xf32> to vector<1x128xf32>
    %222 = arith.negf %221 : vector<1x128xf32>
    %223 = math.exp %222 : vector<1x128xf32>
    %cst_53 = arith.constant 1.000000e+00 : f32
    %224 = vector.broadcast %cst_53 : f32 to vector<1x128xf32>
    %225 = arith.addf %224, %223 : vector<1x128xf32>
    %226 = arith.divf %224, %225 : vector<1x128xf32>
    %227 = vector.extract_strided_slice %214 {offsets = [0, 256], sizes = [1, 128], strides = [1, 1]} : vector<1x512xf32> to vector<1x128xf32>
    %228 = math.tanh %227 : vector<1x128xf32>
    %229 = vector.extract_strided_slice %214 {offsets = [0, 384], sizes = [1, 128], strides = [1, 1]} : vector<1x512xf32> to vector<1x128xf32>
    %230 = arith.negf %229 : vector<1x128xf32>
    %231 = math.exp %230 : vector<1x128xf32>
    %cst_54 = arith.constant 1.000000e+00 : f32
    %232 = vector.broadcast %cst_54 : f32 to vector<1x128xf32>
    %233 = arith.addf %232, %231 : vector<1x128xf32>
    %234 = arith.divf %232, %233 : vector<1x128xf32>
    %235 = arith.mulf %226, %208 : vector<1x128xf32>
    %236 = arith.mulf %220, %228 : vector<1x128xf32>
    %237 = arith.addf %235, %236 : vector<1x128xf32>
    %238 = math.tanh %237 : vector<1x128xf32>
    %239 = arith.mulf %234, %238 : vector<1x128xf32>
    %c0_55 = arith.constant 0 : index
    %c0_56 = arith.constant 0 : index
    %240 = vector.load %arg4[%c0_55, %c0_56] : memref<128x26xf32, #tpu.memory_space<vmem>>, vector<128x26xf32>
    %cst_57 = arith.constant dense<0.000000e+00> : vector<1x26xf32>
    %241 = tpu.matmul %239, %240, %cst_57 {dimension_numbers = #tpu.dot_dimension_numbers<[1], [0], [0], [1], [0, 0, 1, 1], [], []>} : vector<1x128xf32>, vector<128x26xf32>, vector<1x26xf32> -> vector<1x26xf32>
    %c0_58 = arith.constant 0 : index
    %c0_59 = arith.constant 0 : index
    %242 = vector.load %arg5[%c0_58, %c0_59] : memref<1x26xf32, #tpu.memory_space<vmem>>, vector<1x26xf32>
    %243 = arith.addf %241, %242 : vector<1x26xf32>
    %cst_60 = arith.constant dense<0xFF800000> : vector<1xf32>
    %244 = vector.multi_reduction <maximumf>, %243, %cst_60 [1] : vector<1x26xf32> to vector<1xf32>
    %245 = vector.shape_cast %244 : vector<1xf32> to vector<1x1xf32>
    %246 = vector.broadcast %245 : vector<1x1xf32> to vector<1x26xf32>
    %247 = arith.subf %243, %246 : vector<1x26xf32>
    %248 = math.exp %247 : vector<1x26xf32>
    %cst_61 = arith.constant dense<0.000000e+00> : vector<1xf32>
    %249 = vector.multi_reduction <add>, %248, %cst_61 [1] : vector<1x26xf32> to vector<1xf32>
    %250 = vector.shape_cast %249 : vector<1xf32> to vector<1x1xf32>
    %251 = math.log %250 : vector<1x1xf32>
    %252 = vector.broadcast %251 : vector<1x1xf32> to vector<1x26xf32>
    %253 = arith.subf %247, %252 : vector<1x26xf32>
    %c0_62 = arith.constant 0 : index
    %c0_63 = arith.constant 0 : index
    %254 = vector.load %arg6[%c0_62, %c0_63] : memref<1x26xf32, #tpu.memory_space<vmem>>, vector<1x26xf32>
    tpu.vector_store %arg6[%c0_62, %c0_63], %253 {strides = array<i32>} : memref<1x26xf32, #tpu.memory_space<vmem>>, vector<1x26xf32>,
    return
  }
}

</mosaic_0001>

<bundles_post_ra>
// kernel: lstm_namer_forward.1
= control target key start
LH: loop header
LB: loop body
LE: loop exit
PB: predicated region body
PF: predicated region fallthrough
CT: control target
= control target key end

     0   :  { %11 = vsyncpa [#allocation3], 0  ;;  %s3251_s0 = inlined_call_operand.vmem [shape: f32[8,16], index: 0, kind: input, shape index: {}]   ;;  %s3252_s1 = inlined_call_operand.vmem [shape: f32[16,512], index: 1, kind: input, shape index: {}]   ;;  %s3253_s2 = inlined_call_operand.hbm [shape: f32[128,512], index: 2, kind: input, shape index: {}]   ;;  %s3254_s3 = inlined_call_operand.vmem [shape: f32[1,512], index: 3, kind: input, shape index: {}]   ;;  %s3255_s4 = inlined_call_operand.vmem [shape: f32[128,26], index: 4, kind: input, shape index: {}]   ;;  %s3256_s5 = inlined_call_operand.vmem [shape: f32[1,26], index: 5, kind: input, shape index: {}]   ;;  %s3257_s6 = inlined_call_operand.hbm [shape: f32[1,26], index: 6, kind: output, shape index: {}]  }
   0x1   :  { %12 = vsyncpa [#allocation4], 0  ;;  %s2690_s21 = smov [#allocation2]   ;;  %s2642_s25 = scalar_lea.hbm %s3253_s2, 8192 }
   0x2   :  { %s22_s22 = sshll.u32 %s2690_s21, 4  ;;  %p2643_p0 = scmp.ne.s32.totalorder %s3253_s2, %s2642_s25  ;;  %s23_s22 = int_to_ptr.vmem [resolvable:$true] %s22_s22 }
   0x3   :  { %p2646_p1 = scmp.lt.u32.totalorder %s2642_s25, %s3253_s2 }
   0x5   :  { %p2648_p2 = pnand %p2646_p1, %p2643_p0 }
   0x7   :  { %2651 = shalt.err (!%p2648_p2)
}
   0x8   :  { %s2652_s30 = scalar_lea.vmem %s23_s22, 8192  ;;  %p2657_p4 = scmp.lt.s32.totalorder %s23_s22, %s23_s22 }
   0x9   :  { %p2653_p3 = scmp.ne.s32.totalorder %s23_s22, %s2652_s30  ;;  %p2658_p5 = scmp.lt.s32.totalorder %s2652_s30, %s2652_s30 }
   0xb   :  { %p2659_p6 = por %p2658_p5, %p2657_p4 }
   0xd   :  { %p2660_p7 = pnand %p2659_p6, %p2653_p3 }
   0xf   :  { %2663 = shalt.err (!%p2660_p7)
}
  0x10   :  { %s2691_s7 = smov 512   ;;  %s2692_s8 = smov 32  }
  0x11   :  { %28 = dma.hbm_to_vmem [thread:$0]  %s3253_s2, 8192, %s23_s22, [#allocation3], %s2691_s7, %s2691_s7, %s2692_s8  }
  0x12   :  { %2686 = dma.done.wait [#allocation3], 8192  }
  0x13   :  { %2687 = vsyncadd [#allocation3], 4294959104  ;;  %v2693_v0 = vmov 0.0   ;;  %v40_v1 = vld [vmem:[%s3252_s1 + $0x8] sm:$0xff]  ;;  %v39_v6 = vld [vmem:[%s3252_s1] sm:$0xff]  ;;  %vm69_vm0 = vcmask 130048  }
  0x14   :  { %137 = vmatprep.mubr.f32.mxu1 %v2693_v0  ;;  %343 = vmatprep.mubr.f32.mxu0 %v2693_v0  ;;  %v44_v2 = vld [vmem:[%s3252_s1 + $0x28] sm:$0xff]  ;;  %v43_v7 = vld [vmem:[%s3252_s1 + $0x20] sm:$0xff]  ;;  %v42_v12 = vld [vmem:[%s3252_s1 + $0x18] sm:$0xff]  ;;  %vm2695_vm1 = vmmov 0   ;;  %vm1852_vm2 = vcmask 204800   ;;  %s2696_s8 = smov [#allocation5]  }
  0x15   :  { %v216_v3 = vld [vmem:[#allocation2 + $0x8] sm:$0xff]  ;;  %v1959_v4 = vpack.c.bf16 %v44_v2, %v40_v1  ;;  %v1961_v9 = vpack.c.bf16 %v43_v7, %v39_v6  ;;  %v215_v10 = vld [vmem:[#allocation2] sm:$0xff]  ;;  %v46_v14 = vld [vmem:[%s3252_s1 + $0x38] sm:$0xff] }
  0x16   :  { %v220_v5 = vld [vmem:[#allocation2 + $0x28] sm:$0xff]  ;;  %v219_v11 = vld [vmem:[#allocation2 + $0x20] sm:$0xff]  ;;  %v1963_v17 = vpack.c.bf16 %v46_v14, %v42_v12  ;;  %v41_v20 = vld [vmem:[%s3252_s1 + $0x10] sm:$0xff] }
  0x17   :  { %v2758_v8 = vpack.c.bf16 %v220_v5, %v216_v3  ;;  %1960 = vmatprep.subr.bf16.mxu1 %v1959_v4  ;;  %v2763_v13 = vpack.c.bf16 %v219_v11, %v215_v10  ;;  %v224_v15 = vld [vmem:[#allocation2 + $0x48] sm:$0xff]  ;;  %v38_v19 = vld [vmem:[%s3251_s0] sm:$0xff]  ;;  %v45_v21 = vld [vmem:[%s3252_s1 + $0x30] sm:$0xff] }
  0x18   :  { %v228_v16 = vld [vmem:[#allocation2 + $0x68] sm:$0xff]  ;;  %1962 = vmatpush1.bf16.msra.mxu1 %v1961_v9  ;;  %v1965_v22 = vpack.c.bf16 %v45_v21, %v41_v20  ;;  %v223_v23 = vld [vmem:[#allocation2 + $0x40] sm:$0xff]  ;;  %v218_v28 = vld [vmem:[#allocation2 + $0x18] sm:$0xff] }
  0x19   :  { %1968 = vmatprep.subr.bf16.mxu0 %v2758_v8  ;;  %v2769_v18 = vpack.c.bf16 %v228_v16, %v224_v15  ;;  %v227_v24 = vld [vmem:[#allocation2 + $0x60] sm:$0xff]  ;;  %v232_v25 = vld [vmem:[#allocation2 + $0x88] sm:$0xff]  ;;  %1964 = vmatprep.subr.bf16.mxu1 %v1963_v17  ;;  %v222_v29 = vld [vmem:[#allocation2 + $0x38] sm:$0xff] }
  0x1a   :  { %1970 = vmatpush1.bf16.msra.mxu0 %v2763_v13  ;;  %v2782_v26 = vpack.c.bf16 %v227_v24, %v223_v23  ;;  %v236_v27 = vld [vmem:[#allocation2 + $0xa8] sm:$0xff]  ;;  %v2787_v31 = vpack.c.bf16 %v222_v29, %v218_v28  ;;  %v231_v32 = vld [vmem:[#allocation2 + $0x80] sm:$0xff]  ;;  %v217_v34 = vld [vmem:[#allocation2 + $0x10] sm:$0xff] }
  0x1b   :  { %1972 = vmatprep.subr.bf16.mxu0 %v2769_v18  ;;  %1881 = vmatmul.mubr.msk.f32.vlgmr.msra.gmra.mrb[0].mxu1 %vm69_vm0, %v38_v19  ;;  %v2785_v30 = vpack.c.bf16 %v236_v27, %v232_v25  ;;  %v235_v33 = vld [vmem:[#allocation2 + $0xa0] sm:$0xff]  ;;  %v221_v35 = vld [vmem:[#allocation2 + $0x30] sm:$0xff]  ;;  %v240_v36 = vld [vmem:[#allocation2 + $0xc8] sm:$0xff] }
  0x1c   :  { %1966 = vmatpush1.bf16.msra.mxu1 %v1965_v22  ;;  %208 = vmatprep.mubr.f32.mxu1 %v2693_v0  ;;  %v244_v37 = vld [vmem:[#allocation2 + $0xe8] sm:$0xff]  ;;  %v2792_v38 = vpack.c.bf16 %v235_v33, %v231_v32  ;;  %v2794_v39 = vpack.c.bf16 %v221_v35, %v217_v34  ;;  %v226_v40 = vld [vmem:[#allocation2 + $0x58] sm:$0xff]  ;;  %v239_v42 = vld [vmem:[#allocation2 + $0xc0] sm:$0xff] }
  0x1d   :  { %2000 = vmatprep.subr.bf16.mxu1 %v2787_v31  ;;  %v230_v41 = vld [vmem:[#allocation2 + $0x78] sm:$0xff]  ;;  %v2797_v43 = vpack.c.bf16 %v244_v37, %v240_v36  ;;  %v243_v45 = vld [vmem:[#allocation2 + $0xe0] sm:$0xff]  ;;  %v225_v46 = vld [vmem:[#allocation2 + $0x50] sm:$0xff] }
  0x1e   :  { %1974 = vmatpush1.bf16.msra.mxu0 %v2782_v26  ;;  %v2799_v44 = vpack.c.bf16 %v230_v41, %v226_v40  ;;  %v229_v47 = vld [vmem:[#allocation2 + $0x70] sm:$0xff]  ;;  %v248_v48 = vld [vmem:[#allocation2 + $0x108] sm:$0xff]  ;;  %v234_v50 = vld [vmem:[#allocation2 + $0x98] sm:$0xff]  ;;  %v2808_v53 = vpack.c.bf16 %v243_v45, %v239_v42 }
  0x1f   :  { %1976 = vmatprep.subr.bf16.mxu0 %v2785_v30  ;;  %1882 = vmatmul.mubr.msk.f32.vlgmr.msra.gmra.mrb[2].mxu1 %vm69_vm0, %v38_v19  ;;  %v252_v49 = vld [vmem:[#allocation2 + $0x128] sm:$0xff]  ;;  %v2803_v51 = vpack.c.bf16 %v229_v47, %v225_v46  ;;  %v238_v52 = vld [vmem:[#allocation2 + $0xb8] sm:$0xff]  ;;  %v247_v55 = vld [vmem:[#allocation2 + $0x100] sm:$0xff] }
  0x20   :  { %2002 = vmatpush1.bf16.msra.mxu1 %v2794_v39  ;;  %414 = vmatprep.mubr.f32.mxu1 %v2693_v0  ;;  %v2810_v54 = vpack.c.bf16 %v238_v52, %v234_v50  ;;  %v233_v56 = vld [vmem:[#allocation2 + $0x90] sm:$0xff]  ;;  %v2813_v58 = vpack.c.bf16 %v252_v49, %v248_v48  ;;  %v251_v59 = vld [vmem:[#allocation2 + $0x120] sm:$0xff]  ;;  %v242_v60 = vld [vmem:[#allocation2 + $0xd8] sm:$0xff] }
  0x21   :  { %2004 = vmatprep.subr.bf16.mxu1 %v2799_v44  ;;  %v237_v57 = vld [vmem:[#allocation2 + $0xb0] sm:$0xff]  ;;  %v246_v61 = vld [vmem:[#allocation2 + $0xf8] sm:$0xff]  ;;  %v256_v62 = vld [vmem:[#allocation2 + $0x148] sm:$0xff]  ;;  %v2820_v2 = vpack.c.bf16 %v251_v59, %v247_v55 }
  0x22   :  { %1978 = vmatpush1.bf16.msra.mxu0 %v2792_v38  ;;  %v260_v63 = vld [vmem:[#allocation2 + $0x168] sm:$0xff]  ;;  %v2816_v1 = vpack.c.bf16 %v237_v57, %v233_v56  ;;  %v2822_v3 = vpack.c.bf16 %v246_v61, %v242_v60  ;;  %v255_v4 = vld [vmem:[#allocation2 + $0x140] sm:$0xff]  ;;  %v241_v5 = vld [vmem:[#allocation2 + $0xd0] sm:$0xff] }
  0x23   :  { %1980 = vmatprep.subr.bf16.mxu0 %v2797_v43  ;;  %v245_v6 = vld [vmem:[#allocation2 + $0xf0] sm:$0xff]  ;;  %v2825_v7 = vpack.c.bf16 %v260_v63, %v256_v62  ;;  %v259_v9 = vld [vmem:[#allocation2 + $0x160] sm:$0xff]  ;;  %v250_v10 = vld [vmem:[#allocation2 + $0x118] sm:$0xff] }
  0x24   :  { %2006 = vmatpush1.bf16.msra.mxu1 %v2803_v51  ;;  %v254_v11 = vld [vmem:[#allocation2 + $0x138] sm:$0xff]  ;;  %v264_v12 = vld [vmem:[#allocation2 + $0x188] sm:$0xff]  ;;  %v2828_v15 = vpack.c.bf16 %v245_v6, %v241_v5  ;;  %v2832_v16 = vpack.c.bf16 %v259_v9, %v255_v4  ;;  %v263_v19 = vld [vmem:[#allocation2 + $0x180] sm:$0xff]  ;;  %v49_v5 = vlaneseq }
  0x25   :  { %2008 = vmatprep.subr.bf16.mxu1 %v2810_v54  ;;  %v268_v14 = vld [vmem:[#allocation2 + $0x1a8] sm:$0xff]  ;;  %v2834_v17 = vpack.c.bf16 %v254_v11, %v250_v10  ;;  %v249_v20 = vld [vmem:[#allocation2 + $0x110] sm:$0xff]  ;;  %v267_v23 = vld [vmem:[#allocation2 + $0x1a0] sm:$0xff] }
  0x26   :  { %1982 = vmatpush1.bf16.msra.mxu0 %v2808_v53  ;;  %v253_v21 = vld [vmem:[#allocation2 + $0x130] sm:$0xff]  ;;  %v2837_v22 = vpack.c.bf16 %v268_v14, %v264_v12  ;;  %v258_v24 = vld [vmem:[#allocation2 + $0x158] sm:$0xff]  ;;  %v272_v27 = vld [vmem:[#allocation2 + $0x1c8] sm:$0xff]  ;;  %v2844_v32 = vpack.c.bf16 %v267_v23, %v263_v19  ;;  %v50_v6 = vshrl.u32 %v49_v5, 7 }
  0x27   :  { %1984 = vmatprep.subr.bf16.mxu0 %v2813_v58  ;;  %v262_v25 = vld [vmem:[#allocation2 + $0x178] sm:$0xff]  ;;  %v276_v28 = vld [vmem:[#allocation2 + $0x1e8] sm:$0xff]  ;;  %v2840_v29 = vpack.c.bf16 %v253_v21, %v249_v20  ;;  %v271_v34 = vld [vmem:[#allocation2 + $0x1c0] sm:$0xff] }
  0x28   :  { %2010 = vmatpush1.bf16.msra.mxu1 %v2816_v1  ;;  %v2846_v33 = vpack.c.bf16 %v262_v25, %v258_v24  ;;  %v257_v35 = vld [vmem:[#allocation2 + $0x150] sm:$0xff]  ;;  %v2849_v37 = vpack.c.bf16 %v276_v28, %v272_v27  ;;  %v275_v40 = vld [vmem:[#allocation2 + $0x1e0] sm:$0xff]  ;;  %v266_v41 = vld [vmem:[#allocation2 + $0x198] sm:$0xff]  ;;  %v51_v9 = vsub.s32 0, %v50_v6  ;;  %v55_v11 = vsub.s32 1, %v50_v6 }
  0x29   :  { %2012 = vmatprep.subr.bf16.mxu1 %v2822_v3  ;;  %v261_v36 = vld [vmem:[#allocation2 + $0x170] sm:$0xff]  ;;  %v270_v42 = vld [vmem:[#allocation2 + $0x1b8] sm:$0xff]  ;;  %v2856_v46 = vpack.c.bf16 %v275_v40, %v271_v34  ;;  %v47_v10 = vld [vmem:[%s3254_s3] sm:$0xf]  ;;  %v63_v20 = vsub.s32 3, %v50_v6  ;;  %v59_v28 = vsub.s32 2, %v50_v6 }
  0x2a   :  { %1986 = vmatpush1.bf16.msra.mxu0 %v2820_v2  ;;  %v2852_v45 = vpack.c.bf16 %v261_v36, %v257_v35  ;;  %v2858_v47 = vpack.c.bf16 %v270_v42, %v266_v41  ;;  %v265_v48 = vld [vmem:[#allocation2 + $0x190] sm:$0xff]  ;;  %v274_v50 = vld [vmem:[#allocation2 + $0x1d8] sm:$0xff]  ;;  %v52_v12 = vrot.slane %v47_v10, %v51_v9  ;;  %v56_v14 = vrot.slane %v47_v10, %v55_v11 }
  0x2b   :  { %1988 = vmatprep.subr.bf16.mxu0 %v2825_v7  ;;  %v269_v49 = vld [vmem:[#allocation2 + $0x1b0] sm:$0xff]  ;;  %v278_v52 = vld [vmem:[#allocation2 + $0x1f8] sm:$0xff]  ;;  %v64_v34 = vrot.slane %v47_v10, %v63_v20  ;;  %v60_v40 = vrot.slane %v47_v10, %v59_v28 }
  0x2c   :  { %2014 = vmatpush1.bf16.msra.mxu1 %v2828_v15  ;;  %v2862_v55 = vpack.c.bf16 %v269_v49, %v265_v48  ;;  %v2866_v56 = vpack.c.bf16 %v278_v52, %v274_v50  ;;  %v273_v57 = vld [vmem:[#allocation2 + $0x1d0] sm:$0xff] }
  0x2d   :  { %2016 = vmatprep.subr.bf16.mxu1 %v2834_v17  ;;  %v277_v59 = vld [vmem:[#allocation2 + $0x1f0] sm:$0xff] }
  0x2e   :  { %1990 = vmatpush1.bf16.msra.mxu0 %v2832_v16  ;;  %v2871_v60 = vpack.c.bf16 %v277_v59, %v273_v57 }
  0x2f   :  { %1992 = vmatprep.subr.bf16.mxu0 %v2837_v22 }
  0x30   :  { %2018 = vmatpush1.bf16.msra.mxu1 %v2840_v29 }
  0x31   :  { %2020 = vmatprep.subr.bf16.mxu1 %v2846_v33 }
  0x32   :  { %1994 = vmatpush1.bf16.msra.mxu0 %v2844_v32 }
  0x33   :  { %1996 = vmatprep.subr.bf16.mxu0 %v2849_v37 }
  0x34   :  { %2022 = vmatpush1.bf16.msra.mxu1 %v2852_v45 }
  0x35   :  { %2024 = vmatprep.subr.bf16.mxu1 %v2858_v47 }
  0x36   :  { %1998 = vmatpush1.bf16.msra.mxu0 %v2856_v46 }
  0x37   :  { %2032 = vmatprep.subr.bf16.mxu0 %v2758_v8 }
  0x38   :  { %2026 = vmatpush1.bf16.msra.mxu1 %v2862_v55 }
  0x39   :  { %344 = vmatmul.mubr.f32.vlgmr.msra.gmra.mrb[0].mxu0 %v2693_v0  ;;  %2028 = vmatprep.subr.bf16.mxu1 %v2866_v56 }
  0x3a   :  { %2034 = vmatpush1.bf16.msra.mxu0 %v2763_v13  ;;  %513 = vmatprep.mubr.f32.mxu0 %v2693_v0 }
  0x3b   :  { %2036 = vmatprep.subr.bf16.mxu0 %v2769_v18 }
  0x3c   :  { %2030 = vmatpush1.bf16.msra.mxu1 %v2871_v60 }
  0x3d   :  { %2064 = vmatprep.subr.bf16.mxu1 %v2787_v31 }
  0x3e   :  { %2038 = vmatpush1.bf16.msra.mxu0 %v2782_v26 }
  0x3f   :  { %2040 = vmatprep.subr.bf16.mxu0 %v2785_v30  ;;  %415 = vmatmul.mubr.f32.vlgmr.msra.gmra.mrb[4].mxu1 %v2693_v0 }
  0x40   :  { %2066 = vmatpush1.bf16.msra.mxu1 %v2794_v39  ;;  %584 = vmatprep.mubr.f32.mxu1 %v2693_v0 }
  0x41   :  { %2068 = vmatprep.subr.bf16.mxu1 %v2799_v44 }
  0x42   :  { %2042 = vmatpush1.bf16.msra.mxu0 %v2792_v38 }
  0x43   :  { %2044 = vmatprep.subr.bf16.mxu0 %v2797_v43 }
  0x44   :  { %2070 = vmatpush1.bf16.msra.mxu1 %v2803_v51 }
  0x45   :  { %2072 = vmatprep.subr.bf16.mxu1 %v2810_v54 }
  0x46   :  { %2046 = vmatpush1.bf16.msra.mxu0 %v2808_v53 }
  0x47   :  { %2048 = vmatprep.subr.bf16.mxu0 %v2813_v58 }
  0x48   :  { %2074 = vmatpush1.bf16.msra.mxu1 %v2816_v1 }
  0x49   :  { %2076 = vmatprep.subr.bf16.mxu1 %v2822_v3 }
  0x4a   :  { %2050 = vmatpush1.bf16.msra.mxu0 %v2820_v2 }
  0x4b   :  { %2052 = vmatprep.subr.bf16.mxu0 %v2825_v7 }
  0x4c   :  { %2078 = vmatpush1.bf16.msra.mxu1 %v2828_v15 }
  0x4d   :  { %2080 = vmatprep.subr.bf16.mxu1 %v2834_v17 }
  0x4e   :  { %2054 = vmatpush1.bf16.msra.mxu0 %v2832_v16 }
  0x4f   :  { %2056 = vmatprep.subr.bf16.mxu0 %v2837_v22 }
  0x50   :  { %2082 = vmatpush1.bf16.msra.mxu1 %v2840_v29 }
  0x51   :  { %2084 = vmatprep.subr.bf16.mxu1 %v2846_v33 }
  0x52   :  { %2058 = vmatpush1.bf16.msra.mxu0 %v2844_v32 }
  0x53   :  { %2060 = vmatprep.subr.bf16.mxu0 %v2849_v37 }
  0x54   :  { %2086 = vmatpush1.bf16.msra.mxu1 %v2852_v45 }
  0x55   :  { %2088 = vmatprep.subr.bf16.mxu1 %v2858_v47 }
  0x56   :  { %2062 = vmatpush1.bf16.msra.mxu0 %v2856_v46 }
  0x57   :  { %2096 = vmatprep.subr.bf16.mxu0 %v2758_v8 }
  0x58   :  { %2090 = vmatpush1.bf16.msra.mxu1 %v2862_v55 }
  0x59   :  { %2092 = vmatprep.subr.bf16.mxu1 %v2866_v56 }
  0x5c   :  { %2094 = vmatpush1.bf16.msra.mxu1 %v2871_v60 }
  0x5d   :  { %2128 = vmatprep.subr.bf16.mxu1 %v2787_v31 }
  0xee   :  { %v139_v61 = vpop.f32.mrb[0].mxu1 }
  0xef   :  { %v141_v62 = vpop.f32.mrb[1].mxu1  ;;  %v2914_v19 = vadd.f32 %v139_v61, %v52_v12 }
  0xf0   :  { %v2916_v21 = vadd.f32 %v141_v62, %v56_v14 }
  0xf2   :  { %v210_v63 = vpop.f32.mrb[2].mxu1 }
  0xf3   :  { %v212_v4 = vpop.f32.mrb[3].mxu1  ;;  %v2923_v50 = vadd.f32 %v210_v63, %v60_v40 }
  0xf4   :  { %v2920_v41 = vadd.f32 %v212_v4, %v64_v34 }
 0x10c   :  { %v345_v23 = vpop.f32.mrb[0].mxu0 }
 0x10d   :  { %v421_v24 = vadd.f32 %v345_v23, %v2914_v19  ;;  %v347_v25 = vpop.f32.mrb[1].mxu0 }
 0x10e   :  { %v422_v27 = vadd.f32 %v347_v25, %v2916_v21 }
 0x10f   :  { %v1883_v35 = vmul.f32 -1.442695, %v421_v24 }
 0x110   :  { %v1884_v36 = vmul.f32 -1.442695, %v422_v27 }
 0x111   :  { %2510 = vpow2.f32 %v1883_v35 }
 0x112   :  { %2512 = vpow2.f32 %v1884_v36  ;;  %v416_v42 = vpop.f32.mrb[4].mxu1 }
 0x113   :  { %v418_v48 = vpop.f32.mrb[5].mxu1  ;;  %v423_v57 = vadd.f32 %v416_v42, %v2923_v50 }
 0x114   :  { %v424_v49 = vadd.f32 %v418_v48, %v2920_v41 }
 0x116   :  { %v1885_v52 = vmul.f32 -1.442695, %v424_v49 }
 0x118   :  { %2514 = vpow2.f32 %v1885_v52 }
 0x119   :  { %2516 = vtanh.f32 %v423_v57 }
 0x11b   :  { %v2511_v59 = vpop.eup %2510 }
 0x11c   :  { %v2513_v61 = vpop.eup %2512  ;;  %v428_v62 = vadd.f32 1.0, %v2511_v59 }
 0x11d   :  { %v434_v5 = vadd.f32 1.0, %v2513_v61 }
 0x11e   :  { %2518 = vrcp.f32 %v428_v62 }
 0x11f   :  { %2520 = vrcp.f32 %v434_v5 }
 0x122   :  { %v2515_v6 = vpop.eup %2514 }
 0x123   :  { %v2517_v4 = vpop.eup %2516  ;;  %v441_v12 = vadd.f32 1.0, %v2515_v6 }
 0x125   :  { %2522 = vrcp.f32 %v441_v12 }
 0x128   :  { %v2519_v9 = vpop.eup %2518 }
 0x129   :  { %v2521_v10 = vpop.eup %2520  ;;  %v445_v11 = vmul.f32 %v2519_v9, %v2517_v4 }
 0x12a   :  { %v444_v14 = vmul.f32 0.0, %v2521_v10 }
 0x12c   :  { %v2926_v63 = vadd.f32 %v445_v11, %v444_v14 }
 0x12e   :  { %2524 = vtanh.f32 %v2926_v63  ;;  %v627_v14 = vrot.slane %v2926_v63, 7 }
 0x12f   :  { %v2523_v20 = vpop.eup %2522 }
 0x138   :  { %v2525_v23 = vpop.eup %2524 }
 0x139   :  { %v448_v24 = vmul.f32 %v2525_v23, %v2523_v20 }
 0x13b   :  { %514 = vmatmul.mubr.f32.vlgmr.msra.gmra.mrb[2].mxu0 %v448_v24  ;;  %585 = vmatmul.mubr.f32.vlgmr.msra.gmra.mrb[6].mxu1 %v448_v24 }
 0x13c   :  { %2098 = vmatpush1.bf16.msra.mxu0 %v2763_v13  ;;  %2130 = vmatpush1.bf16.msra.mxu1 %v2794_v39 }
 0x13d   :  { %2100 = vmatprep.subr.bf16.mxu0 %v2769_v18  ;;  %2132 = vmatprep.subr.bf16.mxu1 %v2799_v44 }
 0x13e   :  { %701 = vmatprep.mubr.f32.mxu0 %v2693_v0  ;;  %772 = vmatprep.mubr.f32.mxu1 %v2693_v0 }
 0x140   :  { %2102 = vmatpush1.bf16.msra.mxu0 %v2782_v26  ;;  %2134 = vmatpush1.bf16.msra.mxu1 %v2803_v51 }
 0x141   :  { %2104 = vmatprep.subr.bf16.mxu0 %v2785_v30  ;;  %2136 = vmatprep.subr.bf16.mxu1 %v2810_v54 }
 0x144   :  { %2106 = vmatpush1.bf16.msra.mxu0 %v2792_v38  ;;  %2138 = vmatpush1.bf16.msra.mxu1 %v2816_v1 }
 0x145   :  { %2108 = vmatprep.subr.bf16.mxu0 %v2797_v43  ;;  %2140 = vmatprep.subr.bf16.mxu1 %v2822_v3 }
 0x148   :  { %2110 = vmatpush1.bf16.msra.mxu0 %v2808_v53  ;;  %2142 = vmatpush1.bf16.msra.mxu1 %v2828_v15 }
 0x149   :  { %2112 = vmatprep.subr.bf16.mxu0 %v2813_v58  ;;  %2144 = vmatprep.subr.bf16.mxu1 %v2834_v17 }
 0x14c   :  { %2114 = vmatpush1.bf16.msra.mxu0 %v2820_v2  ;;  %2146 = vmatpush1.bf16.msra.mxu1 %v2840_v29 }
 0x14d   :  { %2116 = vmatprep.subr.bf16.mxu0 %v2825_v7  ;;  %2148 = vmatprep.subr.bf16.mxu1 %v2846_v33 }
 0x150   :  { %2118 = vmatpush1.bf16.msra.mxu0 %v2832_v16  ;;  %2150 = vmatpush1.bf16.msra.mxu1 %v2852_v45 }
 0x151   :  { %2120 = vmatprep.subr.bf16.mxu0 %v2837_v22  ;;  %2152 = vmatprep.subr.bf16.mxu1 %v2858_v47 }
 0x154   :  { %2122 = vmatpush1.bf16.msra.mxu0 %v2844_v32  ;;  %2154 = vmatpush1.bf16.msra.mxu1 %v2862_v55 }
 0x155   :  { %2124 = vmatprep.subr.bf16.mxu0 %v2849_v37  ;;  %2156 = vmatprep.subr.bf16.mxu1 %v2866_v56 }
 0x158   :  { %2126 = vmatpush1.bf16.msra.mxu0 %v2856_v46  ;;  %2158 = vmatpush1.bf16.msra.mxu1 %v2871_v60 }
 0x159   :  { %2160 = vmatprep.subr.bf16.mxu0 %v2758_v8  ;;  %2192 = vmatprep.subr.bf16.mxu1 %v2787_v31 }
 0x20e   :  { %v515_v25 = vpop.f32.mrb[2].mxu0  ;;  %v586_v27 = vpop.f32.mrb[6].mxu1 }
 0x20f   :  { %v595_v28 = vrot.slane %v515_v25, 7  ;;  %v517_v34 = vpop.f32.mrb[3].mxu0  ;;  %v588_v35 = vpop.f32.mrb[7].mxu1  ;;  %v597_v59 = vrot.slane %v586_v27, 7 }
 0x210   :  { %v596_v36 = vrot.slane %v517_v34, 7  ;;  %v598_v52 = vrot.slane %v588_v35, 7 }
 0x211   :  { %v603_v40 = vadd.f32 %v595_v28, %v2914_v19  ;;  %v605_v62 = vadd.f32 %v597_v59, %v2923_v50 }
 0x212   :  { %v604_v42 = vadd.f32 %v596_v36, %v2916_v21  ;;  %v606_v57 = vadd.f32 %v598_v52, %v2920_v41 }
 0x213   :  { %v1886_v48 = vmul.f32 -1.442695, %v603_v40 }
 0x214   :  { %v1887_v49 = vmul.f32 -1.442695, %v604_v42  ;;  %v1888_v61 = vmul.f32 -1.442695, %v606_v57 }
 0x215   :  { %2526 = vpow2.f32 %v1886_v48 }
 0x216   :  { %2528 = vpow2.f32 %v1887_v49 }
 0x217   :  { %2530 = vpow2.f32 %v1888_v61 }
 0x218   :  { %2532 = vtanh.f32 %v605_v62 }
 0x21f   :  { %v2527_v5 = vpop.eup %2526 }
 0x220   :  { %v2529_v6 = vpop.eup %2528  ;;  %v610_v4 = vadd.f32 1.0, %v2527_v5 }
 0x221   :  { %v616_v9 = vadd.f32 1.0, %v2529_v6  ;;  %v2531_v10 = vpop.eup %2530 }
 0x222   :  { %2534 = vrcp.f32 %v610_v4  ;;  %v2533_v11 = vpop.eup %2532  ;;  %v623_v24 = vadd.f32 1.0, %v2531_v10 }
 0x223   :  { %2536 = vrcp.f32 %v616_v9 }
 0x224   :  { %2538 = vrcp.f32 %v623_v24 }
 0x22c   :  { %v2535_v12 = vpop.eup %2534 }
 0x22d   :  { %v2537_v20 = vpop.eup %2536  ;;  %v630_v23 = vmul.f32 %v2535_v12, %v2533_v11 }
 0x22e   :  { %v629_v25 = vmul.f32 %v2537_v20, %v627_v14  ;;  %v2539_v28 = vpop.eup %2538 }
 0x230   :  { %v2968_v27 = vadd.f32 %v630_v23, %v629_v25 }
 0x232   :  { %2540 = vtanh.f32 %v2968_v27 }
 0x23c   :  { %v2541_v34 = vpop.eup %2540 }
 0x23d   :  { %v633_v35 = vmul.f32 %v2541_v34, %v2539_v28  ;;  %v815_v28 = vrot.slane %v2968_v27, 7 }
 0x23f   :  { %v635_v36 = vrot.slane %v633_v35, 1 }
 0x241   :  { %702 = vmatmul.mubr.f32.vlgmr.msra.gmra.mrb[4].mxu0 %v635_v36  ;;  %773 = vmatmul.mubr.f32.vlgmr.msra.gmra.mrb[8].mxu1 %v635_v36 }
 0x242   :  { %2162 = vmatpush1.bf16.msra.mxu0 %v2763_v13  ;;  %2194 = vmatpush1.bf16.msra.mxu1 %v2794_v39 }
 0x243   :  { %2164 = vmatprep.subr.bf16.mxu0 %v2769_v18  ;;  %2196 = vmatprep.subr.bf16.mxu1 %v2799_v44 }
 0x244   :  { %889 = vmatprep.mubr.f32.mxu0 %v2693_v0  ;;  %960 = vmatprep.mubr.f32.mxu1 %v2693_v0 }
 0x246   :  { %2166 = vmatpush1.bf16.msra.mxu0 %v2782_v26  ;;  %2198 = vmatpush1.bf16.msra.mxu1 %v2803_v51 }
 0x247   :  { %2168 = vmatprep.subr.bf16.mxu0 %v2785_v30  ;;  %2200 = vmatprep.subr.bf16.mxu1 %v2810_v54 }
 0x24a   :  { %2170 = vmatpush1.bf16.msra.mxu0 %v2792_v38  ;;  %2202 = vmatpush1.bf16.msra.mxu1 %v2816_v1 }
 0x24b   :  { %2172 = vmatprep.subr.bf16.mxu0 %v2797_v43  ;;  %2204 = vmatprep.subr.bf16.mxu1 %v2822_v3 }
 0x24e   :  { %2174 = vmatpush1.bf16.msra.mxu0 %v2808_v53  ;;  %2206 = vmatpush1.bf16.msra.mxu1 %v2828_v15 }
 0x24f   :  { %2176 = vmatprep.subr.bf16.mxu0 %v2813_v58  ;;  %2208 = vmatprep.subr.bf16.mxu1 %v2834_v17 }
 0x252   :  { %2178 = vmatpush1.bf16.msra.mxu0 %v2820_v2  ;;  %2210 = vmatpush1.bf16.msra.mxu1 %v2840_v29 }
 0x253   :  { %2180 = vmatprep.subr.bf16.mxu0 %v2825_v7  ;;  %2212 = vmatprep.subr.bf16.mxu1 %v2846_v33 }
 0x256   :  { %2182 = vmatpush1.bf16.msra.mxu0 %v2832_v16  ;;  %2214 = vmatpush1.bf16.msra.mxu1 %v2852_v45 }
 0x257   :  { %2184 = vmatprep.subr.bf16.mxu0 %v2837_v22  ;;  %2216 = vmatprep.subr.bf16.mxu1 %v2858_v47 }
 0x25a   :  { %2186 = vmatpush1.bf16.msra.mxu0 %v2844_v32  ;;  %2218 = vmatpush1.bf16.msra.mxu1 %v2862_v55 }
 0x25b   :  { %2188 = vmatprep.subr.bf16.mxu0 %v2849_v37  ;;  %2220 = vmatprep.subr.bf16.mxu1 %v2866_v56 }
 0x25e   :  { %2190 = vmatpush1.bf16.msra.mxu0 %v2856_v46  ;;  %2222 = vmatpush1.bf16.msra.mxu1 %v2871_v60 }
 0x25f   :  { %2224 = vmatprep.subr.bf16.mxu0 %v2758_v8  ;;  %2256 = vmatprep.subr.bf16.mxu1 %v2787_v31 }
 0x314   :  { %v703_v63 = vpop.f32.mrb[4].mxu0  ;;  %v774_v40 = vpop.f32.mrb[8].mxu1 }
 0x315   :  { %v783_v42 = vrot.slane %v703_v63, 6  ;;  %v705_v48 = vpop.f32.mrb[5].mxu0  ;;  %v776_v49 = vpop.f32.mrb[9].mxu1  ;;  %v785_v4 = vrot.slane %v774_v40, 6 }
 0x316   :  { %v784_v52 = vrot.slane %v705_v48, 6  ;;  %v786_v5 = vrot.slane %v776_v49, 6 }
 0x317   :  { %v791_v57 = vadd.f32 %v783_v42, %v2914_v19  ;;  %v793_v10 = vadd.f32 %v785_v4, %v2923_v50 }
 0x318   :  { %v792_v59 = vadd.f32 %v784_v52, %v2916_v21  ;;  %v794_v6 = vadd.f32 %v786_v5, %v2920_v41 }
 0x319   :  { %v1889_v61 = vmul.f32 -1.442695, %v791_v57 }
 0x31a   :  { %v1890_v62 = vmul.f32 -1.442695, %v792_v59  ;;  %v1891_v9 = vmul.f32 -1.442695, %v794_v6 }
 0x31b   :  { %2542 = vpow2.f32 %v1889_v61 }
 0x31c   :  { %2544 = vpow2.f32 %v1890_v62 }
 0x31d   :  { %2546 = vpow2.f32 %v1891_v9 }
 0x31e   :  { %2548 = vtanh.f32 %v793_v10 }
 0x325   :  { %v2543_v11 = vpop.eup %2542 }
 0x326   :  { %v2545_v12 = vpop.eup %2544  ;;  %v798_v14 = vadd.f32 1.0, %v2543_v11 }
 0x327   :  { %v804_v20 = vadd.f32 1.0, %v2545_v12  ;;  %v2547_v23 = vpop.eup %2546 }
 0x328   :  { %2550 = vrcp.f32 %v798_v14  ;;  %v2549_v24 = vpop.eup %2548  ;;  %v811_v36 = vadd.f32 1.0, %v2547_v23 }
 0x329   :  { %2552 = vrcp.f32 %v804_v20 }
 0x32a   :  { %2554 = vrcp.f32 %v811_v36 }
 0x332   :  { %v2551_v25 = vpop.eup %2550 }
 0x333   :  { %v2553_v34 = vpop.eup %2552  ;;  %v818_v35 = vmul.f32 %v2551_v25, %v2549_v24 }
 0x334   :  { %v817_v63 = vmul.f32 %v2553_v34, %v815_v28  ;;  %v2555_v42 = vpop.eup %2554 }
 0x336   :  { %v3010_v40 = vadd.f32 %v818_v35, %v817_v63 }
 0x338   :  { %2556 = vtanh.f32 %v3010_v40 }
 0x342   :  { %v2557_v48 = vpop.eup %2556 }
 0x343   :  { %v821_v49 = vmul.f32 %v2557_v48, %v2555_v42  ;;  %v1003_v42 = vrot.slane %v3010_v40, 7 }
 0x345   :  { %v823_v52 = vrot.slane %v821_v49, 2 }
 0x347   :  { %890 = vmatmul.mubr.f32.vlgmr.msra.gmra.mrb[6].mxu0 %v823_v52  ;;  %961 = vmatmul.mubr.f32.vlgmr.msra.gmra.mrb[10].mxu1 %v823_v52 }
 0x348   :  { %2226 = vmatpush1.bf16.msra.mxu0 %v2763_v13  ;;  %2258 = vmatpush1.bf16.msra.mxu1 %v2794_v39 }
 0x349   :  { %2228 = vmatprep.subr.bf16.mxu0 %v2769_v18  ;;  %2260 = vmatprep.subr.bf16.mxu1 %v2799_v44 }
 0x34a   :  { %1077 = vmatprep.mubr.f32.mxu0 %v2693_v0  ;;  %1148 = vmatprep.mubr.f32.mxu1 %v2693_v0 }
 0x34c   :  { %2230 = vmatpush1.bf16.msra.mxu0 %v2782_v26  ;;  %2262 = vmatpush1.bf16.msra.mxu1 %v2803_v51 }
 0x34d   :  { %2232 = vmatprep.subr.bf16.mxu0 %v2785_v30  ;;  %2264 = vmatprep.subr.bf16.mxu1 %v2810_v54 }
 0x350   :  { %2234 = vmatpush1.bf16.msra.mxu0 %v2792_v38  ;;  %2266 = vmatpush1.bf16.msra.mxu1 %v2816_v1 }
 0x351   :  { %2236 = vmatprep.subr.bf16.mxu0 %v2797_v43  ;;  %2268 = vmatprep.subr.bf16.mxu1 %v2822_v3 }
 0x354   :  { %2238 = vmatpush1.bf16.msra.mxu0 %v2808_v53  ;;  %2270 = vmatpush1.bf16.msra.mxu1 %v2828_v15 }
 0x355   :  { %2240 = vmatprep.subr.bf16.mxu0 %v2813_v58  ;;  %2272 = vmatprep.subr.bf16.mxu1 %v2834_v17 }
 0x358   :  { %2242 = vmatpush1.bf16.msra.mxu0 %v2820_v2  ;;  %2274 = vmatpush1.bf16.msra.mxu1 %v2840_v29 }
 0x359   :  { %2244 = vmatprep.subr.bf16.mxu0 %v2825_v7  ;;  %2276 = vmatprep.subr.bf16.mxu1 %v2846_v33 }
 0x35c   :  { %2246 = vmatpush1.bf16.msra.mxu0 %v2832_v16  ;;  %2278 = vmatpush1.bf16.msra.mxu1 %v2852_v45 }
 0x35d   :  { %2248 = vmatprep.subr.bf16.mxu0 %v2837_v22  ;;  %2280 = vmatprep.subr.bf16.mxu1 %v2858_v47 }
 0x360   :  { %2250 = vmatpush1.bf16.msra.mxu0 %v2844_v32  ;;  %2282 = vmatpush1.bf16.msra.mxu1 %v2862_v55 }
 0x361   :  { %2252 = vmatprep.subr.bf16.mxu0 %v2849_v37  ;;  %2284 = vmatprep.subr.bf16.mxu1 %v2866_v56 }
 0x364   :  { %2254 = vmatpush1.bf16.msra.mxu0 %v2856_v46  ;;  %2286 = vmatpush1.bf16.msra.mxu1 %v2871_v60 }
 0x365   :  { %2288 = vmatprep.subr.bf16.mxu0 %v2758_v8  ;;  %2320 = vmatprep.subr.bf16.mxu1 %v2787_v31 }
 0x41a   :  { %v891_v27 = vpop.f32.mrb[6].mxu0  ;;  %v962_v57 = vpop.f32.mrb[10].mxu1 }
 0x41b   :  { %v971_v59 = vrot.slane %v891_v27, 5  ;;  %v893_v61 = vpop.f32.mrb[7].mxu0  ;;  %v964_v62 = vpop.f32.mrb[11].mxu1  ;;  %v973_v14 = vrot.slane %v962_v57, 5 }
 0x41c   :  { %v972_v5 = vrot.slane %v893_v61, 5  ;;  %v974_v11 = vrot.slane %v964_v62, 5 }
 0x41d   :  { %v979_v6 = vadd.f32 %v971_v59, %v2914_v19  ;;  %v981_v23 = vadd.f32 %v973_v14, %v2923_v50 }
 0x41e   :  { %v980_v4 = vadd.f32 %v972_v5, %v2916_v21  ;;  %v982_v12 = vadd.f32 %v974_v11, %v2920_v41 }
 0x41f   :  { %v1892_v9 = vmul.f32 -1.442695, %v979_v6 }
 0x420   :  { %v1893_v10 = vmul.f32 -1.442695, %v980_v4  ;;  %v1894_v20 = vmul.f32 -1.442695, %v982_v12 }
 0x421   :  { %2558 = vpow2.f32 %v1892_v9 }
 0x422   :  { %2560 = vpow2.f32 %v1893_v10 }
 0x423   :  { %2562 = vpow2.f32 %v1894_v20 }
 0x424   :  { %2564 = vtanh.f32 %v981_v23 }
 0x42b   :  { %v2559_v24 = vpop.eup %2558 }
 0x42c   :  { %v2561_v25 = vpop.eup %2560  ;;  %v986_v28 = vadd.f32 1.0, %v2559_v24 }
 0x42d   :  { %v992_v34 = vadd.f32 1.0, %v2561_v25  ;;  %v2563_v35 = vpop.eup %2562 }
 0x42e   :  { %2566 = vrcp.f32 %v986_v28  ;;  %v2565_v36 = vpop.eup %2564  ;;  %v999_v52 = vadd.f32 1.0, %v2563_v35 }
 0x42f   :  { %2568 = vrcp.f32 %v992_v34 }
 0x430   :  { %2570 = vrcp.f32 %v999_v52 }
 0x438   :  { %v2567_v63 = vpop.eup %2566 }
 0x439   :  { %v2569_v48 = vpop.eup %2568  ;;  %v1006_v49 = vmul.f32 %v2567_v63, %v2565_v36 }
 0x43a   :  { %v1005_v27 = vmul.f32 %v2569_v48, %v1003_v42  ;;  %v2571_v59 = vpop.eup %2570 }
 0x43c   :  { %v3052_v57 = vadd.f32 %v1006_v49, %v1005_v27 }
 0x43e   :  { %2572 = vtanh.f32 %v3052_v57 }
 0x448   :  { %v2573_v61 = vpop.eup %2572 }
 0x449   :  { %v1009_v62 = vmul.f32 %v2573_v61, %v2571_v59  ;;  %v1191_v59 = vrot.slane %v3052_v57, 7 }
 0x44b   :  { %v1011_v5 = vrot.slane %v1009_v62, 3 }
 0x44d   :  { %1078 = vmatmul.mubr.f32.vlgmr.msra.gmra.mrb[8].mxu0 %v1011_v5  ;;  %1149 = vmatmul.mubr.f32.vlgmr.msra.gmra.mrb[12].mxu1 %v1011_v5 }
 0x44e   :  { %2290 = vmatpush1.bf16.msra.mxu0 %v2763_v13  ;;  %2322 = vmatpush1.bf16.msra.mxu1 %v2794_v39 }
 0x44f   :  { %2292 = vmatprep.subr.bf16.mxu0 %v2769_v18  ;;  %2324 = vmatprep.subr.bf16.mxu1 %v2799_v44 }
 0x450   :  { %1265 = vmatprep.mubr.f32.mxu0 %v2693_v0  ;;  %1336 = vmatprep.mubr.f32.mxu1 %v2693_v0 }
 0x452   :  { %2294 = vmatpush1.bf16.msra.mxu0 %v2782_v26  ;;  %2326 = vmatpush1.bf16.msra.mxu1 %v2803_v51 }
 0x453   :  { %2296 = vmatprep.subr.bf16.mxu0 %v2785_v30  ;;  %2328 = vmatprep.subr.bf16.mxu1 %v2810_v54 }
 0x456   :  { %2298 = vmatpush1.bf16.msra.mxu0 %v2792_v38  ;;  %2330 = vmatpush1.bf16.msra.mxu1 %v2816_v1 }
 0x457   :  { %2300 = vmatprep.subr.bf16.mxu0 %v2797_v43  ;;  %2332 = vmatprep.subr.bf16.mxu1 %v2822_v3 }
 0x45a   :  { %2302 = vmatpush1.bf16.msra.mxu0 %v2808_v53  ;;  %2334 = vmatpush1.bf16.msra.mxu1 %v2828_v15 }
 0x45b   :  { %2304 = vmatprep.subr.bf16.mxu0 %v2813_v58  ;;  %2336 = vmatprep.subr.bf16.mxu1 %v2834_v17 }
 0x45e   :  { %2306 = vmatpush1.bf16.msra.mxu0 %v2820_v2  ;;  %2338 = vmatpush1.bf16.msra.mxu1 %v2840_v29 }
 0x45f   :  { %2308 = vmatprep.subr.bf16.mxu0 %v2825_v7  ;;  %2340 = vmatprep.subr.bf16.mxu1 %v2846_v33 }
 0x462   :  { %2310 = vmatpush1.bf16.msra.mxu0 %v2832_v16  ;;  %2342 = vmatpush1.bf16.msra.mxu1 %v2852_v45 }
 0x463   :  { %2312 = vmatprep.subr.bf16.mxu0 %v2837_v22  ;;  %2344 = vmatprep.subr.bf16.mxu1 %v2858_v47 }
 0x466   :  { %2314 = vmatpush1.bf16.msra.mxu0 %v2844_v32  ;;  %2346 = vmatpush1.bf16.msra.mxu1 %v2862_v55 }
 0x467   :  { %2316 = vmatprep.subr.bf16.mxu0 %v2849_v37  ;;  %2348 = vmatprep.subr.bf16.mxu1 %v2866_v56 }
 0x46a   :  { %2318 = vmatpush1.bf16.msra.mxu0 %v2856_v46  ;;  %2350 = vmatpush1.bf16.msra.mxu1 %v2871_v60 }
 0x46b   :  { %2352 = vmatprep.subr.bf16.mxu0 %v2758_v8  ;;  %2384 = vmatprep.subr.bf16.mxu1 %v2787_v31 }
 0x520   :  { %v1079_v40 = vpop.f32.mrb[8].mxu0  ;;  %v1150_v6 = vpop.f32.mrb[12].mxu1 }
 0x521   :  { %v1159_v4 = vrot.slane %v1079_v40, 4  ;;  %v1081_v9 = vpop.f32.mrb[9].mxu0  ;;  %v1152_v10 = vpop.f32.mrb[13].mxu1  ;;  %v1161_v28 = vrot.slane %v1150_v6, 4 }
 0x522   :  { %v1160_v11 = vrot.slane %v1081_v9, 4  ;;  %v1162_v24 = vrot.slane %v1152_v10, 4 }
 0x523   :  { %v1167_v12 = vadd.f32 %v1159_v4, %v2914_v19  ;;  %v1169_v35 = vadd.f32 %v1161_v28, %v2923_v50 }
 0x524   :  { %v1168_v14 = vadd.f32 %v1160_v11, %v2916_v21  ;;  %v1170_v25 = vadd.f32 %v1162_v24, %v2920_v41 }
 0x525   :  { %v1895_v20 = vmul.f32 -1.442695, %v1167_v12 }
 0x526   :  { %v1896_v23 = vmul.f32 -1.442695, %v1168_v14  ;;  %v1897_v34 = vmul.f32 -1.442695, %v1170_v25 }
 0x527   :  { %2574 = vpow2.f32 %v1895_v20 }
 0x528   :  { %2576 = vpow2.f32 %v1896_v23 }
 0x529   :  { %2578 = vpow2.f32 %v1897_v34 }
 0x52a   :  { %2580 = vtanh.f32 %v1169_v35 }
 0x531   :  { %v2575_v36 = vpop.eup %2574 }
 0x532   :  { %v2577_v63 = vpop.eup %2576  ;;  %v1174_v42 = vadd.f32 1.0, %v2575_v36 }
 0x533   :  { %v1180_v48 = vadd.f32 1.0, %v2577_v63  ;;  %v2579_v49 = vpop.eup %2578 }
 0x534   :  { %2582 = vrcp.f32 %v1174_v42  ;;  %v2581_v52 = vpop.eup %2580  ;;  %v1187_v5 = vadd.f32 1.0, %v2579_v49 }
 0x535   :  { %2584 = vrcp.f32 %v1180_v48 }
 0x536   :  { %2586 = vrcp.f32 %v1187_v5 }
 0x53e   :  { %v2583_v27 = vpop.eup %2582 }
 0x53f   :  { %v2585_v61 = vpop.eup %2584  ;;  %v1194_v62 = vmul.f32 %v2583_v27, %v2581_v52 }
 0x540   :  { %v1193_v40 = vmul.f32 %v2585_v61, %v1191_v59  ;;  %v2587_v4 = vpop.eup %2586 }
 0x542   :  { %v3094_v6 = vadd.f32 %v1194_v62, %v1193_v40 }
 0x544   :  { %2588 = vtanh.f32 %v3094_v6  ;;  %v1379_v5 = vrot.slane %v3094_v6, 7 }
 0x54e   :  { %v2589_v9 = vpop.eup %2588 }
 0x54f   :  { %v1197_v10 = vmul.f32 %v2589_v9, %v2587_v4 }
 0x551   :  { %v1199_v11 = vrot.slane %v1197_v10, 4 }
 0x553   :  { %1266 = vmatmul.mubr.f32.vlgmr.msra.gmra.mrb[10].mxu0 %v1199_v11  ;;  %1337 = vmatmul.mubr.f32.vlgmr.msra.gmra.mrb[14].mxu1 %v1199_v11 }
 0x554   :  { %2354 = vmatpush1.bf16.msra.mxu0 %v2763_v13  ;;  %2386 = vmatpush1.bf16.msra.mxu1 %v2794_v39 }
 0x555   :  { %2356 = vmatprep.subr.bf16.mxu0 %v2769_v18  ;;  %2388 = vmatprep.subr.bf16.mxu1 %v2799_v44 }
 0x556   :  { %1453 = vmatprep.mubr.f32.mxu0 %v2693_v0  ;;  %1524 = vmatprep.mubr.f32.mxu1 %v2693_v0 }
 0x558   :  { %2358 = vmatpush1.bf16.msra.mxu0 %v2782_v26  ;;  %2390 = vmatpush1.bf16.msra.mxu1 %v2803_v51 }
 0x559   :  { %2360 = vmatprep.subr.bf16.mxu0 %v2785_v30  ;;  %2392 = vmatprep.subr.bf16.mxu1 %v2810_v54 }
 0x55c   :  { %2362 = vmatpush1.bf16.msra.mxu0 %v2792_v38  ;;  %2394 = vmatpush1.bf16.msra.mxu1 %v2816_v1 }
 0x55d   :  { %2364 = vmatprep.subr.bf16.mxu0 %v2797_v43  ;;  %2396 = vmatprep.subr.bf16.mxu1 %v2822_v3 }
 0x560   :  { %2366 = vmatpush1.bf16.msra.mxu0 %v2808_v53  ;;  %2398 = vmatpush1.bf16.msra.mxu1 %v2828_v15 }
 0x561   :  { %2368 = vmatprep.subr.bf16.mxu0 %v2813_v58  ;;  %2400 = vmatprep.subr.bf16.mxu1 %v2834_v17 }
 0x564   :  { %2370 = vmatpush1.bf16.msra.mxu0 %v2820_v2  ;;  %2402 = vmatpush1.bf16.msra.mxu1 %v2840_v29 }
 0x565   :  { %2372 = vmatprep.subr.bf16.mxu0 %v2825_v7  ;;  %2404 = vmatprep.subr.bf16.mxu1 %v2846_v33 }
 0x568   :  { %2374 = vmatpush1.bf16.msra.mxu0 %v2832_v16  ;;  %2406 = vmatpush1.bf16.msra.mxu1 %v2852_v45 }
 0x569   :  { %2376 = vmatprep.subr.bf16.mxu0 %v2837_v22  ;;  %2408 = vmatprep.subr.bf16.mxu1 %v2858_v47 }
 0x56c   :  { %2378 = vmatpush1.bf16.msra.mxu0 %v2844_v32  ;;  %2410 = vmatpush1.bf16.msra.mxu1 %v2862_v55 }
 0x56d   :  { %2380 = vmatprep.subr.bf16.mxu0 %v2849_v37  ;;  %2412 = vmatprep.subr.bf16.mxu1 %v2866_v56 }
 0x570   :  { %2382 = vmatpush1.bf16.msra.mxu0 %v2856_v46  ;;  %2414 = vmatpush1.bf16.msra.mxu1 %v2871_v60 }
 0x571   :  { %2416 = vmatprep.subr.bf16.mxu0 %v2758_v8  ;;  %2448 = vmatprep.subr.bf16.mxu1 %v2787_v31 }
 0x626   :  { %v1267_v57 = vpop.f32.mrb[10].mxu0  ;;  %v1338_v12 = vpop.f32.mrb[14].mxu1 }
 0x627   :  { %v1347_v14 = vrot.slane %v1267_v57, 3  ;;  %v1269_v20 = vpop.f32.mrb[11].mxu0  ;;  %v1340_v23 = vpop.f32.mrb[15].mxu1  ;;  %v1349_v8 = vrot.slane %v1338_v12, 3 }
 0x628   :  { %v1348_v24 = vrot.slane %v1269_v20, 3  ;;  %v1350_v36 = vrot.slane %v1340_v23, 3 }
 0x629   :  { %v1355_v25 = vadd.f32 %v1347_v14, %v2914_v19  ;;  %v1357_v31 = vadd.f32 %v1349_v8, %v2923_v50  ;;  %v1766_v8 = vld [vmem:[%s3255_s4 + $0x20] sm:$0xff] }
 0x62a   :  { %v1356_v28 = vadd.f32 %v1348_v24, %v2916_v21  ;;  %v1358_v63 = vadd.f32 %v1350_v36, %v2920_v41  ;;  %v1762_v24 = vld [vmem:[%s3255_s4] sm:$0xff]  ;;  %v1765_v36 = vld [vmem:[%s3255_s4 + $0x18] sm:$0xff] }
 0x62b   :  { %v1898_v34 = vmul.f32 -1.442695, %v1355_v25  ;;  %v1763_v25 = vld [vmem:[%s3255_s4 + $0x8] sm:$0xff] }
 0x62c   :  { %v1899_v35 = vmul.f32 -1.442695, %v1356_v28  ;;  %v1900_v42 = vmul.f32 -1.442695, %v1358_v63  ;;  %v2480_v28 = vpack.c.bf16 %v1763_v25, %v1762_v24 }
 0x62d   :  { %2590 = vpow2.f32 %v1898_v34  ;;  %v2694_v34 = vmov 0.0|0.0  }
 0x62e   :  { %2592 = vpow2.f32 %v1899_v35  ;;  %v1764_v35 = vld [vmem:[%s3255_s4 + $0x10] sm:$0xff] }
 0x62f   :  { %2594 = vpow2.f32 %v1900_v42  ;;  %v2483_v63 = vpack.c.bf16 %v1765_v36, %v1764_v35  ;;  %v1767_v42 = vld [vmem:[%s3255_s4 + $0x28] sm:$0xff] }
 0x630   :  { %2596 = vtanh.f32 %v1357_v31  ;;  %v2486_v31 = vpack.c.bf16 %v1767_v42, %v1766_v8 }
 0x637   :  { %v2591_v48 = vpop.eup %2590 }
 0x638   :  { %v2593_v49 = vpop.eup %2592  ;;  %v1362_v52 = vadd.f32 1.0, %v2591_v48  ;;  %v1768_v48 = vld [vmem:[%s3255_s4 + $0x30] sm:$0xff] }
 0x639   :  { %v1368_v27 = vadd.f32 1.0, %v2593_v49  ;;  %v2595_v59 = vpop.eup %2594  ;;  %v1769_v49 = vld [vmem:[%s3255_s4 + $0x38] sm:$0xff] }
 0x63a   :  { %2598 = vrcp.f32 %v1362_v52  ;;  %v2597_v61 = vpop.eup %2596  ;;  %v1375_v9 = vadd.f32 1.0, %v2595_v59  ;;  %v2489_v52 = vpack.c.bf16 %v1769_v49, %v1768_v48  ;;  %v1771_v59 = vld [vmem:[%s3255_s4 + $0x48] sm:$0xff] }
 0x63b   :  { %2600 = vrcp.f32 %v1368_v27  ;;  %v1770_v27 = vld [vmem:[%s3255_s4 + $0x40] sm:$0xff] }
 0x63c   :  { %2602 = vrcp.f32 %v1375_v9 }
 0x644   :  { %v2599_v62 = vpop.eup %2598 }
 0x645   :  { %v2601_v40 = vpop.eup %2600  ;;  %v1382_v4 = vmul.f32 %v2599_v62, %v2597_v61  ;;  %v2492_v61 = vpack.c.bf16 %v1771_v59, %v1770_v27  ;;  %v1772_v62 = vld [vmem:[%s3255_s4 + $0x50] sm:$0xff] }
 0x646   :  { %v1381_v10 = vmul.f32 %v2601_v40, %v1379_v5  ;;  %v2603_v57 = vpop.eup %2602  ;;  %v1773_v5 = vld [vmem:[%s3255_s4 + $0x58] sm:$0xff] }
 0x647   :  { %v2495_v40 = vpack.c.bf16 %v1773_v5, %v1772_v62 }
 0x648   :  { %v3136_v11 = vadd.f32 %v1382_v4, %v1381_v10  ;;  %v1774_v4 = vld [vmem:[%s3255_s4 + $0x60] sm:$0xff]  ;;  %v1776_v10 = vld [vmem:[%s3255_s4 + $0x70] sm:$0xff] }
 0x64a   :  { %2604 = vtanh.f32 %v3136_v11 }
 0x654   :  { %v2605_v12 = vpop.eup %2604 }
 0x655   :  { %v1385_v14 = vmul.f32 %v2605_v12, %v2603_v57 }
 0x657   :  { %v1387_v20 = vrot.slane %v1385_v14, 5 }
 0x659   :  { %1454 = vmatmul.mubr.f32.vlgmr.msra.gmra.mrb[12].mxu0 %v1387_v20  ;;  %1525 = vmatmul.mubr.f32.vlgmr.msra.gmra.mrb[16].mxu1 %v1387_v20 }
 0x65a   :  { %2418 = vmatpush1.bf16.msra.mxu0 %v2763_v13  ;;  %2450 = vmatpush1.bf16.msra.mxu1 %v2794_v39 }
 0x65b   :  { %2420 = vmatprep.subr.bf16.mxu0 %v2769_v18  ;;  %2452 = vmatprep.subr.bf16.mxu1 %v2799_v44 }
 0x65c   :  { %1641 = vmatprep.mubr.f32.mxu0 %v2693_v0  ;;  %1712 = vmatprep.mubr.f32.mxu1 %v2693_v0 }
 0x65e   :  { %2422 = vmatpush1.bf16.msra.mxu0 %v2782_v26  ;;  %2454 = vmatpush1.bf16.msra.mxu1 %v2803_v51 }
 0x65f   :  { %2424 = vmatprep.subr.bf16.mxu0 %v2785_v30  ;;  %2456 = vmatprep.subr.bf16.mxu1 %v2810_v54 }
 0x662   :  { %2426 = vmatpush1.bf16.msra.mxu0 %v2792_v38  ;;  %2458 = vmatpush1.bf16.msra.mxu1 %v2816_v1 }
 0x663   :  { %2428 = vmatprep.subr.bf16.mxu0 %v2797_v43  ;;  %2460 = vmatprep.subr.bf16.mxu1 %v2822_v3 }
 0x666   :  { %2430 = vmatpush1.bf16.msra.mxu0 %v2808_v53  ;;  %2462 = vmatpush1.bf16.msra.mxu1 %v2828_v15 }
 0x667   :  { %2432 = vmatprep.subr.bf16.mxu0 %v2813_v58  ;;  %2464 = vmatprep.subr.bf16.mxu1 %v2834_v17 }
 0x66a   :  { %2434 = vmatpush1.bf16.msra.mxu0 %v2820_v2  ;;  %2466 = vmatpush1.bf16.msra.mxu1 %v2840_v29 }
 0x66b   :  { %2436 = vmatprep.subr.bf16.mxu0 %v2825_v7  ;;  %2468 = vmatprep.subr.bf16.mxu1 %v2846_v33  ;;  %v1567_v33 = vrot.slane %v3136_v11, 7  ;;  %v1777_v11 = vld [vmem:[%s3255_s4 + $0x78] sm:$0xff] }
 0x66c   :  { %v2501_v57 = vpack.c.bf16 %v1777_v11, %v1776_v10 }
 0x66e   :  { %2438 = vmatpush1.bf16.msra.mxu0 %v2832_v16  ;;  %2470 = vmatpush1.bf16.msra.mxu1 %v2852_v45 }
 0x66f   :  { %2440 = vmatprep.subr.bf16.mxu0 %v2837_v22  ;;  %2472 = vmatprep.subr.bf16.mxu1 %v2858_v47 }
 0x672   :  { %2442 = vmatpush1.bf16.msra.mxu0 %v2844_v32  ;;  %2474 = vmatpush1.bf16.msra.mxu1 %v2862_v55 }
 0x673   :  { %2444 = vmatprep.subr.bf16.mxu0 %v2849_v37  ;;  %2476 = vmatprep.subr.bf16.mxu1 %v2866_v56 }
 0x676   :  { %2446 = vmatpush1.bf16.msra.mxu0 %v2856_v46  ;;  %2478 = vmatpush1.bf16.msra.mxu1 %v2871_v60 }
 0x677   :  { %2479 = vmatprep.subr.bf16.mxu0 %v2694_v34 }
 0x72c   :  { %v1455_v13 = vpop.f32.mrb[12].mxu0  ;;  %v1526_v18 = vpop.f32.mrb[16].mxu1 }
 0x72d   :  { %v1535_v26 = vrot.slane %v1455_v13, 2  ;;  %v1457_v30 = vpop.f32.mrb[13].mxu0  ;;  %v1528_v38 = vpop.f32.mrb[17].mxu1  ;;  %v1537_v1 = vrot.slane %v1526_v18, 2 }
 0x72e   :  { %v1536_v39 = vrot.slane %v1457_v30, 2  ;;  %v1538_v54 = vrot.slane %v1528_v38, 2 }
 0x72f   :  { %v1543_v43 = vadd.f32 %v1535_v26, %v2914_v19  ;;  %v1545_v3 = vadd.f32 %v1537_v1, %v2923_v50 }
 0x730   :  { %v1544_v44 = vadd.f32 %v1536_v39, %v2916_v21  ;;  %v1546_v58 = vadd.f32 %v1538_v54, %v2920_v41 }
 0x731   :  { %v1901_v51 = vmul.f32 -1.442695, %v1543_v43 }
 0x732   :  { %v1902_v53 = vmul.f32 -1.442695, %v1544_v44  ;;  %v1903_v2 = vmul.f32 -1.442695, %v1546_v58 }
 0x733   :  { %2606 = vpow2.f32 %v1901_v51 }
 0x734   :  { %2608 = vpow2.f32 %v1902_v53 }
 0x735   :  { %2610 = vpow2.f32 %v1903_v2 }
 0x736   :  { %2612 = vtanh.f32 %v1545_v3 }
 0x73d   :  { %v2607_v7 = vpop.eup %2606 }
 0x73e   :  { %v2609_v15 = vpop.eup %2608  ;;  %v1550_v16 = vadd.f32 1.0, %v2607_v7 }
 0x73f   :  { %v1556_v17 = vadd.f32 1.0, %v2609_v15  ;;  %v2611_v22 = vpop.eup %2610 }
 0x740   :  { %2614 = vrcp.f32 %v1550_v16  ;;  %v2613_v29 = vpop.eup %2612  ;;  %v1563_v46 = vadd.f32 1.0, %v2611_v22 }
 0x741   :  { %2616 = vrcp.f32 %v1556_v17 }
 0x742   :  { %2618 = vrcp.f32 %v1563_v46  ;;  %v1778_v46 = vld [vmem:[%s3256_s5] sm:$0x1]  ;;  %s1872_s5 = sshll.u32 %s2696_s8, 4  ;;  %s1873_s5 = int_to_ptr.vmem [resolvable:$true] %s1872_s5 }
 0x743   :  { %s2664_s9 = scalar_lea.vmem %s1873_s5, 16  ;;  %s2668_s10 = scalar_lea.vmem %s1873_s5, 32 }
 0x744   :  { %p2665_p8 = scmp.ne.s32.totalorder %s1873_s5, %s2664_s9  ;;  %p2669_p9 = scmp.lt.s32.totalorder %s1873_s5, %s1873_s5 }
 0x745   :  { %p2670_p10 = scmp.lt.s32.totalorder %s2668_s10, %s2664_s9 }
 0x747   :  { %p2671_p11 = por %p2670_p10, %p2669_p9 }
 0x749   :  { %p2672_p12 = pnand %p2671_p11, %p2665_p8 }
 0x74a   :  { %v2615_v32 = vpop.eup %2614 }
 0x74b   :  { %v2617_v37 = vpop.eup %2616  ;;  %v1570_v45 = vmul.f32 %v2615_v32, %v2613_v29 }
 0x74c   :  { %v1569_v47 = vmul.f32 %v2617_v37, %v1567_v33  ;;  %v2619_v56 = vpop.eup %2618 }
 0x74e   :  { %v3176_v55 = vadd.f32 %v1570_v45, %v1569_v47 }
 0x750   :  { %2620 = vtanh.f32 %v3176_v55  ;;  %v1755_v16 = vrot.slane %v3176_v55, 7 }
 0x75a   :  { %v2621_v60 = vpop.eup %2620 }
 0x75b   :  { %v1573_v6 = vmul.f32 %v2621_v60, %v2619_v56 }
 0x75d   :  { %v1575_v23 = vrot.slane %v1573_v6, 6 }
 0x75f   :  { %1642 = vmatmul.mubr.f32.vlgmr.msra.gmra.mrb[14].mxu0 %v1575_v23  ;;  %1713 = vmatmul.mubr.f32.vlgmr.msra.gmra.mrb[18].mxu1 %v1575_v23 }
 0x760   :  { %2481 = vmatpush3.bf16.msra.mxu0 %v2480_v28  ;;  %1956 = vmatprep.mubr.msk.f32.mxu0 %vm2695_vm1, %v2693_v0  ;;  %v1775_v0 = vld [vmem:[%s3255_s4 + $0x68] sm:$0xff] }
 0x761   :  { %2482 = vmatprep.subr.bf16.mxu0 %v2694_v34  ;;  %v2498_v9 = vpack.c.bf16 %v1775_v0, %v1774_v4 }
 0x764   :  { %2484 = vmatpush3.bf16.msra.mxu0 %v2483_v63 }
 0x765   :  { %2485 = vmatprep.subr.bf16.mxu0 %v2694_v34 }
 0x768   :  { %2487 = vmatpush3.bf16.msra.mxu0 %v2486_v31 }
 0x769   :  { %2488 = vmatprep.subr.bf16.mxu0 %v2694_v34 }
 0x76c   :  { %2490 = vmatpush3.bf16.msra.mxu0 %v2489_v52 }
 0x76d   :  { %2491 = vmatprep.subr.bf16.mxu0 %v2694_v34 }
 0x770   :  { %2493 = vmatpush3.bf16.msra.mxu0 %v2492_v61 }
 0x771   :  { %2494 = vmatprep.subr.bf16.mxu0 %v2694_v34 }
 0x774   :  { %2496 = vmatpush3.bf16.msra.mxu0 %v2495_v40 }
 0x775   :  { %2497 = vmatprep.subr.bf16.mxu0 %v2694_v34 }
 0x778   :  { %2499 = vmatpush3.bf16.msra.mxu0 %v2498_v9 }
 0x779   :  { %2500 = vmatprep.subr.bf16.mxu0 %v2694_v34 }
 0x77c   :  { %2502 = vmatpush3.bf16.msra.mxu0 %v2501_v57 }
 0x832   :  { %v1643_v12 = vpop.f32.mrb[14].mxu0  ;;  %v1714_v14 = vpop.f32.mrb[18].mxu1 }
 0x833   :  { %v1723_v20 = vrot.slane %v1643_v12, 1  ;;  %v1645_v13 = vpop.f32.mrb[15].mxu0  ;;  %v1716_v18 = vpop.f32.mrb[19].mxu1  ;;  %v1725_v53 = vrot.slane %v1714_v14, 1 }
 0x834   :  { %v1724_v26 = vrot.slane %v1645_v13, 1  ;;  %v1726_v44 = vrot.slane %v1716_v18, 1 }
 0x835   :  { %v1731_v30 = vadd.f32 %v1723_v20, %v2914_v19  ;;  %v1733_v58 = vadd.f32 %v1725_v53, %v2923_v50 }
 0x836   :  { %v1732_v38 = vadd.f32 %v1724_v26, %v2916_v21  ;;  %v1734_v51 = vadd.f32 %v1726_v44, %v2920_v41 }
 0x837   :  { %v1904_v39 = vmul.f32 -1.442695, %v1731_v30 }
 0x838   :  { %v1905_v43 = vmul.f32 -1.442695, %v1732_v38  ;;  %v1906_v54 = vmul.f32 -1.442695, %v1734_v51 }
 0x839   :  { %2622 = vpow2.f32 %v1904_v39 }
 0x83a   :  { %2624 = vpow2.f32 %v1905_v43 }
 0x83b   :  { %2626 = vpow2.f32 %v1906_v54 }
 0x83c   :  { %2628 = vtanh.f32 %v1733_v58 }
 0x843   :  { %v2623_v1 = vpop.eup %2622 }
 0x844   :  { %v2625_v2 = vpop.eup %2624  ;;  %v1738_v3 = vadd.f32 1.0, %v2623_v1 }
 0x845   :  { %v1744_v7 = vadd.f32 1.0, %v2625_v2  ;;  %v2627_v19 = vpop.eup %2626 }
 0x846   :  { %2630 = vrcp.f32 %v1738_v3  ;;  %v2629_v21 = vpop.eup %2628  ;;  %v1751_v41 = vadd.f32 1.0, %v2627_v19 }
 0x847   :  { %2632 = vrcp.f32 %v1744_v7 }
 0x848   :  { %2634 = vrcp.f32 %v1751_v41 }
 0x850   :  { %v2631_v15 = vpop.eup %2630 }
 0x851   :  { %v2633_v17 = vpop.eup %2632  ;;  %v1758_v22 = vmul.f32 %v2631_v15, %v2629_v21 }
 0x852   :  { %v1757_v29 = vmul.f32 %v2633_v17, %v1755_v16  ;;  %v2635_v50 = vpop.eup %2634 }
 0x854   :  { %v1759_v32 = vadd.f32 %v1758_v22, %v1757_v29 }
 0x856   :  { %2636 = vtanh.f32 %v1759_v32 }
 0x860   :  { %v2637_v33 = vpop.eup %2636 }
 0x861   :  { %v1761_v37 = vmul.f32 %v2637_v33, %v2635_v50 }
 0x863   :  { %v1780_v45 = vrot.slane %v1761_v37, 7 }
 0x865   :  { %1957 = vmatmul.mubr.f32.vlgmr.msra.gmra.mrb[16].mxu0 %v1780_v45 }
 0x938   :  { %v1848_v47 = vpop.f32.mrb[16].mxu0 }
 0x939   :  { %v1849_v56 = vadd.f32 %v1848_v47, %v1778_v46  ;;  %v1958_v55 = vpop.f32.mrb[17].mxu0 }
 0x93b   :  { %v1853_v60 = vsel %vm1852_vm2, %v1849_v56, -inf }
 0x93c   :  { %1854 = vmax.xlane.f32.xlu0 %v1853_v60 }
 0x9c9   :  { %v1855_v6 = vpop.xlane.xlu0 %1854 }
 0x9ca   :  { %v1856_v23 = vsub.f32 %v1849_v56, %v1855_v6 }
 0x9cc   :  { %v1857_v24 = vmul.f32 1.442695, %v1856_v23 }
 0x9ce   :  { %2638 = vpow2.f32 %v1857_v24 }
 0x9d8   :  { %v2639_v25 = vpop.eup %2638 }
 0x9d9   :  { %v1859_v28 = vsel %vm1852_vm2, %v2639_v25, 0.0 }
 0x9da   :  { %1860 = vadd.xlane.f32.xlu0 %v1859_v28 }
 0xa67   :  { %v1861_v34 = vpop.xlane.xlu0 %1860 }
 0xa68   :  { %2640 = vlog2.f32 %v1861_v34 }
 0xa72   :  { %v2641_v35 = vpop.eup %2640 }
 0xa73   :  { %v1863_v36 = vmul.f32 0.6931472, %v2641_v35 }
 0xa75   :  { %v1864_v63 = vsub.f32 %v1856_v23, %v1863_v36 }
 0xa77   :  { %1865 = vst.msk [vmem:[#allocation5] sm:$0x1] %vm1852_vm2, %v1864_v63 }
 0xa78   :  { %2675 = shalt.err (!%p2672_p12)
}
 0xa79   :  { %s2676_s13 = scalar_lea.hbm %s3257_s6, 16 }
 0xa7a   :  { %p2677_p13 = scmp.ne.s32.totalorder %s3257_s6, %s2676_s13  ;;  %p2680_p0 = scmp.lt.u32.totalorder %s2676_s13, %s3257_s6 }
 0xa7c   :  { %p2682_p1 = pnand %p2680_p0, %p2677_p13 }
 0xa7e   :  { %2685 = shalt.err (!%p2682_p1)
}
 0xa7f   :  { %1875 = dma.vmem_to_hbm [thread:$0]  %s1873_s5, 16, %s3257_s6, [#allocation4]  }
 0xa80   :  { %2688 = dma.done.wait [#allocation4], 16  }
 0xa81   :  { %2689 = vsyncadd [#allocation4], 4294967280 }
 0xa82   :  { %1879 = vsyncpa [#allocation3], 1 }
 0xa83   :  { %1880 = vsyncpa [#allocation4], 1 }

</bundles_post_ra>
